<compile_context>
chip_gen: v6e
topology: v6e:2x2x1
jax: 0.10.0
libtpu: 0.0.40
codegen_flags: <defaults>
</compile_context>

<pallas_src>
import functools

import jax
import jax.numpy as jnp
import numpy as np
from jax.experimental import pallas as pl
from jax.experimental.pallas import tpu as pltpu

NORMALIZE = False  # PyG DenseSAGEConv default normalize=False.


def _block_kernel(x_ref, adj_ref, w1_ref, b1_ref, w2_ref, b2_ref,
                  wl1_ref, wl2_ref, bl_ref, out_ref, *, mxu_dtype):
    bn = adj_ref.shape[0]          # Bt*N rows of the block-diagonal adjacency

    # Self-loops via a single 2-D iota compare (no eye materialization, no
    # per-batch int32 temporaries).  Adjacency stays raw 0/1 (exact in bf16);
    # the 1/deg scale is applied to the f32 aggregation result below, matching
    # the reference order sum_j(a_ij * x_j) / deg_i.
    rows = jax.lax.broadcasted_iota(jnp.int32, (bn, bn), 0)
    cols = jax.lax.broadcasted_iota(jnp.int32, (bn, bn), 1)
    adj = jnp.where(rows == cols, jnp.asarray(1.0, adj_ref.dtype), adj_ref[...])
    deg = jnp.maximum(
        jnp.sum(adj.astype(jnp.float32), axis=-1, keepdims=True), 1.0)  # (BN,1)
    adj_m = adj.astype(mxu_dtype)

    def sage(h, w_ref, b_ref):
        # One block-diagonal (BN, BN) @ (BN, F) matmul keeps the MXU fed with
        # BN dense rows and a single stationary-operand load per layer, instead
        # of Bt tiny per-graph (N, N) matmuls.  f32 accumulation throughout.
        agg = jnp.dot(adj_m, h.astype(mxu_dtype),
                      preferred_element_type=jnp.float32) / deg      # (BN, F)
        out = jnp.dot(agg.astype(mxu_dtype), w_ref[...].astype(mxu_dtype),
                      preferred_element_type=jnp.float32)
        out = out + b_ref[...].astype(jnp.float32)                   # (BN, C)
        if NORMALIZE:
            sq = jnp.sum(out * out, axis=-1, keepdims=True)
            out = out * jax.lax.rsqrt(jnp.maximum(sq, 1e-24))
        return out

    x1 = jnp.maximum(sage(x_ref[...], w1_ref, b1_ref), 0.0)          # (BN, H)
    x2 = jnp.maximum(sage(x1, w2_ref, b2_ref), 0.0)                  # (BN, O)

    # lin(cat([x1, x2], -1)) with the Linear weight pre-split (and zero-padded
    # to a lane-dense 128-wide output in the wrapper) -> unmasked full-lane store.
    out = (jnp.dot(x1.astype(mxu_dtype), wl1_ref[...].astype(mxu_dtype),
                   preferred_element_type=jnp.float32)
           + jnp.dot(x2.astype(mxu_dtype), wl2_ref[...].astype(mxu_dtype),
                     preferred_element_type=jnp.float32)
           + bl_ref[...].astype(jnp.float32))                        # (BN, Opad)
    out_ref[...] = out.astype(out_ref.dtype)


def _pick_block_batch(batch, n_nodes, target_rows=512):
    """Largest divisor Bt of `batch` with Bt*N <= target_rows and grid >= 2.

    512 rows/step fills the 2x256-wide v6e/v7x MXUs and v5e's 4x128 MXUs;
    keeping Bt <= batch//2 leaves >= 2 grid steps for v7x's two TensorCores.
    """
    cap = batch // 2 if batch >= 2 else batch
    best = 1
    for bt in range(1, cap + 1):
        if batch % bt == 0 and bt * n_nodes <= target_rows:
            best = bt
    return best


def block_forward(x, adj, params, *, block_batch=None, mxu_dtype=jnp.float32):
    """x: (B, N, Fin) f32, adj: (B, N, N) f32 -> (B, N, out_channels) f32."""
    B, N, Fin = x.shape
    w1, b1, w2, b2, wlin, blin = (params["w1"], params["b1"], params["w2"],
                                  params["b2"], params["wlin"], params["blin"])
    H = w1.shape[1]
    O = w2.shape[1]

    Bt = block_batch if block_batch is not None else _pick_block_batch(B, N)
    assert B % Bt == 0, "block_batch must divide the batch"
    G = B // Bt
    BtN = Bt * N

    # torch Linear is y = z @ W.T + b with W: (O, H+O).  Split W.T into the x1
    # and x2 pieces and zero-pad the output dim to a lane-dense 128 lanes.
    Opad = max(128, ((O + 127) // 128) * 128)
    wlt = wlin.T                                                   # (H+O, O)
    wl1 = jnp.pad(wlt[:H, :], ((0, 0), (0, Opad - O)))             # (H, Opad)
    wl2 = jnp.pad(wlt[H:, :], ((0, 0), (0, Opad - O)))             # (O, Opad)
    blp = jnp.pad(blin.reshape(1, O), ((0, 0), (0, Opad - O))).astype(jnp.float32)
    b1_2d = b1.reshape(1, H).astype(jnp.float32)
    b2_2d = b2.reshape(1, O).astype(jnp.float32)

    # MXU operands (adj/x/weights).  bf16 halves HBM bytes on ALL generations
    # (v5e's MXU takes bf16 natively; only elementwise math needs f32 there,
    # and deg/bias/relu stay f32 in-kernel).  The 0/1 adjacency is exact in
    # bf16 because 1/deg is applied after the f32-accumulated aggregation.
    x_c = x.reshape(G, BtN, Fin).astype(mxu_dtype)
    adj_c = adj.astype(mxu_dtype).reshape(G, Bt, N, N)
    # Block-diagonal layout: one dense (BtN, BtN) aggregation matmul per grid
    # step.  Costs a Bt-fold adjacency inflation in HBM, so only used while
    # the picker keeps BtN <= 512 (small-N regime).
    eye_bt = jnp.eye(Bt, dtype=adj_c.dtype)
    adj_bd = jnp.einsum("gbij,bc->gbicj", adj_c, eye_bt).reshape(G, BtN, BtN)
    w1_c = w1.astype(mxu_dtype)
    w2_c = w2.astype(mxu_dtype)
    wl1_c = wl1.astype(mxu_dtype)
    wl2_c = wl2.astype(mxu_dtype)

    flops_per_step = (2 * BtN * BtN * (Fin + H)
                      + 2 * BtN * (Fin * H + H * O + H * Opad + O * Opad))
    bytes_accessed = int(
        x_c.size * x_c.dtype.itemsize + adj_bd.size * adj_bd.dtype.itemsize
        + B * N * Opad * 4
        + sum(int(w.size) * w.dtype.itemsize
              for w in (w1_c, w2_c, wl1_c, wl2_c))
        + (H + O + Opad) * 4)

    out_flat = pl.pallas_call(
        functools.partial(_block_kernel, mxu_dtype=mxu_dtype),
        out_shape=jax.ShapeDtypeStruct((B * N, Opad), jnp.float32),
        grid_spec=pl.GridSpec(
            grid=(G,),
            in_specs=[
                pl.BlockSpec((None, BtN, Fin), lambda g: (g, 0, 0)),  # x
                pl.BlockSpec((None, BtN, BtN), lambda g: (g, 0, 0)),  # adj (blkdiag)
                # Grid-invariant weights/biases (tiny at these sizes).
                pl.BlockSpec((Fin, H), lambda g: (0, 0)),             # w1
                pl.BlockSpec((1, H), lambda g: (0, 0)),               # b1
                pl.BlockSpec((H, O), lambda g: (0, 0)),               # w2
                pl.BlockSpec((1, O), lambda g: (0, 0)),               # b2
                pl.BlockSpec((H, Opad), lambda g: (0, 0)),            # wl (x1 part)
                pl.BlockSpec((O, Opad), lambda g: (0, 0)),            # wl (x2 part)
                pl.BlockSpec((1, Opad), lambda g: (0, 0)),            # bl
            ],
            out_specs=pl.BlockSpec((BtN, Opad), lambda g: (g, 0)),
        ),
        compiler_params=pltpu.CompilerParams(
            dimension_semantics=("parallel",)),
        cost_estimate=pl.CostEstimate(
            flops=int(G * flops_per_step),
            transcendentals=0,
            bytes_accessed=bytes_accessed),
    )(x_c, adj_bd, w1_c, b1_2d, w2_c, b2_2d, wl1_c, wl2_c, blp)

    # (B*N, Opad) -> (B, N, O): metadata reshape + cheap slice in XLA.
    # TODO(synk): if B*N grows enough to be HBM-write-bound (v5e first), emit a
    #             bf16 or transposed (O, Bt*N) output slab instead of Opad=128.
    return out_flat.reshape(B, N, Opad)[..., :O]


def block_forward_ref(x, adj, params):
    """Pure-JAX reference mirroring the PyTorch forward."""
    B, N, _ = adj.shape
    eye = jnp.eye(N, dtype=x.dtype)[None]
    adj = adj * (1.0 - eye) + eye
    deg = jnp.maximum(jnp.sum(adj, axis=-1, keepdims=True), 1.0)

    def sage(h, w, b):
        out = jnp.einsum("bij,bjf->bif", adj, h) / deg
        out = jnp.einsum("bif,fo->bio", out, w) + b
        if NORMALIZE:
            out = out / jnp.maximum(
                jnp.linalg.norm(out, axis=-1, keepdims=True), 1e-12)
        return out

    x1 = jax.nn.relu(sage(x, params["w1"], params["b1"]))
    x2 = jax.nn.relu(sage(x1, params["w2"], params["b2"]))
    z = jnp.concatenate([x1, x2], axis=-1)
    return jnp.einsum("bif,of->bio", z, params["wlin"]) + params["blin"]


def init_params(key, in_channels, hidden_channels, out_channels):
    ks = jax.random.split(key, 6)
    scale = 0.1
    return {
        "w1": scale * jax.random.normal(ks[0], (in_channels, hidden_channels), jnp.float32),
        "b1": scale * jax.random.normal(ks[1], (hidden_channels,), jnp.float32),
        "w2": scale * jax.random.normal(ks[2], (hidden_channels, out_channels), jnp.float32),
        "b2": scale * jax.random.normal(ks[3], (out_channels,), jnp.float32),
        # torch.nn.Linear weight layout: (out_features, in_features)
        "wlin": scale * jax.random.normal(
            ks[4], (out_channels, hidden_channels + out_channels), jnp.float32),
        "blin": scale * jax.random.normal(ks[5], (out_channels,), jnp.float32),
    }


if __name__ == "__main__":
    # Bt=16 -> 256 MXU rows per step (full 256-wide v6e/v7x pass), grid length 2.
    B, N = 32, 16
    in_channels, hidden_channels, out_channels = 8, 32, 16

    key = jax.random.PRNGKey(0)
    kx, kadj, kp = jax.random.split(key, 3)

    x = jax.random.normal(kx, (B, N, in_channels), jnp.float32)
    # random symmetric 0/1 adjacency, zero diagonal
    a = (jax.random.uniform(kadj, (B, N, N)) < 0.3).astype(jnp.float32)
    adj = jnp.clip(a + jnp.swapaxes(a, -1, -2), 0.0, 1.0)
    adj = adj * (1.0 - jnp.eye(N, dtype=jnp.float32)[None])

    params = init_params(kp, in_channels, hidden_channels, out_channels)
    ref = block_forward_ref(x, adj, params)

    # Exact f32 MXU-operand path.
    out = block_forward(x, adj, params)
    jax.block_until_ready(out)
    np.testing.assert_allclose(np.asarray(out), np.asarray(ref),
                               rtol=1e-5, atol=1e-5)

    # bf16 MXU-operand path (recommended on v5e/v6e/v7x): halves adj/x/weight
    # HBM bytes; adjacency stays exact 0/1, accumulation stays f32.
    out_bf16 = block_forward(x, adj, params, mxu_dtype=jnp.bfloat16)
    jax.block_until_ready(out_bf16)
    np.testing.assert_allclose(np.asarray(out_bf16), np.asarray(ref),
                               rtol=5e-2, atol=5e-2)

    print("KERNEL_OK")
</pallas_src>

<mosaic_0001>
module attributes {stable_mosaic.version = 11 : i64} {
  func.func @_block_kernel(%arg0: i32, %arg1: memref<1x256x8xf32, #tpu.memory_space<vmem>>, %arg2: memref<1x256x256xf32, #tpu.memory_space<vmem>>, %arg3: memref<8x32xf32, #tpu.memory_space<vmem>>, %arg4: memref<1x32xf32, #tpu.memory_space<vmem>>, %arg5: memref<32x16xf32, #tpu.memory_space<vmem>>, %arg6: memref<1x16xf32, #tpu.memory_space<vmem>>, %arg7: memref<32x128xf32, #tpu.memory_space<vmem>>, %arg8: memref<16x128xf32, #tpu.memory_space<vmem>>, %arg9: memref<1x128xf32, #tpu.memory_space<vmem>>, %arg10: memref<256x128xf32, #tpu.memory_space<vmem>>) attributes {dimension_semantics = [#tpu.dimension_semantics<parallel>], iteration_bounds = array<i64: 2>, scalar_prefetch = 0 : i64, scratch_operands = 0 : i64, tpu.core_type = #tpu.core_type<tc>, window_params = [{transform_indices = @transform_0, window_bounds = array<i64: 1, 256, 8>}, {transform_indices = @transform_1, window_bounds = array<i64: 1, 256, 256>}, {pipeline_mode = #tpu.pipeline_mode<synchronous>, transform_indices = @transform_2, window_bounds = array<i64: 8, 32>}, {pipeline_mode = #tpu.pipeline_mode<synchronous>, transform_indices = @transform_3, window_bounds = array<i64: 1, 32>}, {pipeline_mode = #tpu.pipeline_mode<synchronous>, transform_indices = @transform_4, window_bounds = array<i64: 32, 16>}, {pipeline_mode = #tpu.pipeline_mode<synchronous>, transform_indices = @transform_5, window_bounds = array<i64: 1, 16>}, {pipeline_mode = #tpu.pipeline_mode<synchronous>, transform_indices = @transform_6, window_bounds = array<i64: 32, 128>}, {pipeline_mode = #tpu.pipeline_mode<synchronous>, transform_indices = @transform_7, window_bounds = array<i64: 16, 128>}, {pipeline_mode = #tpu.pipeline_mode<synchronous>, transform_indices = @transform_8, window_bounds = array<i64: 1, 128>}, {transform_indices = @transform_9, window_bounds = array<i64: 256, 128>}]} {
    %0 = tpu.iota {dimensions = array<i32: 0>} : vector<256x256xi32>
    %1 = tpu.iota {dimensions = array<i32: 1>} : vector<256x256xi32>
    %2 = arith.cmpi eq, %0, %1 : vector<256x256xi32>
    %c0 = arith.constant 0 : index
    %c0_0 = arith.constant 0 : index
    %c0_1 = arith.constant 0 : index
    %3 = vector.load %arg2[%c0, %c0_0, %c0_1] : memref<1x256x256xf32, #tpu.memory_space<vmem>>, vector<1x256x256xf32>
    %4 = vector.shape_cast %3 : vector<1x256x256xf32> to vector<256x256xf32>
    %cst = arith.constant 1.000000e+00 : f32
    %5 = vector.broadcast %cst : f32 to vector<256x256xf32>
    %6 = arith.select %2, %5, %4 : vector<256x256xi1>, vector<256x256xf32>
    %cst_2 = arith.constant dense<0.000000e+00> : vector<256xf32>
    %7 = vector.multi_reduction <add>, %6, %cst_2 [1] : vector<256x256xf32> to vector<256xf32>
    %8 = vector.shape_cast %7 : vector<256xf32> to vector<256x1xf32>
    %cst_3 = arith.constant 1.000000e+00 : f32
    %9 = vector.broadcast %cst_3 : f32 to vector<256x1xf32>
    %10 = arith.maximumf %8, %9 : vector<256x1xf32>
    %c0_4 = arith.constant 0 : index
    %c0_5 = arith.constant 0 : index
    %c0_6 = arith.constant 0 : index
    %11 = vector.load %arg1[%c0_4, %c0_5, %c0_6] : memref<1x256x8xf32, #tpu.memory_space<vmem>>, vector<1x256x8xf32>
    %12 = vector.shape_cast %11 : vector<1x256x8xf32> to vector<256x8xf32>
    %cst_7 = arith.constant dense<0.000000e+00> : vector<256x8xf32>
    %13 = tpu.matmul %6, %12, %cst_7 {dimension_numbers = #tpu.dot_dimension_numbers<[1], [0], [0], [1], [0, 0, 1, 1], [], []>} : vector<256x256xf32>, vector<256x8xf32>, vector<256x8xf32> -> vector<256x8xf32>
    %14 = vector.broadcast %10 : vector<256x1xf32> to vector<256x8xf32>
    %15 = arith.divf %13, %14 : vector<256x8xf32>
    %c0_8 = arith.constant 0 : index
    %c0_9 = arith.constant 0 : index
    %16 = vector.load %arg3[%c0_8, %c0_9] : memref<8x32xf32, #tpu.memory_space<vmem>>, vector<8x32xf32>
    %cst_10 = arith.constant dense<0.000000e+00> : vector<256x32xf32>
    %17 = tpu.matmul %15, %16, %cst_10 {dimension_numbers = #tpu.dot_dimension_numbers<[1], [0], [0], [1], [0, 0, 1, 1], [], []>} : vector<256x8xf32>, vector<8x32xf32>, vector<256x32xf32> -> vector<256x32xf32>
    %c0_11 = arith.constant 0 : index
    %c0_12 = arith.constant 0 : index
    %18 = vector.load %arg4[%c0_11, %c0_12] : memref<1x32xf32, #tpu.memory_space<vmem>>, vector<1x32xf32>
    %19 = vector.broadcast %18 : vector<1x32xf32> to vector<256x32xf32>
    %20 = arith.addf %17, %19 : vector<256x32xf32>
    %cst_13 = arith.constant 0.000000e+00 : f32
    %21 = vector.broadcast %cst_13 : f32 to vector<256x32xf32>
    %22 = arith.maximumf %20, %21 : vector<256x32xf32>
    %cst_14 = arith.constant dense<0.000000e+00> : vector<256x32xf32>
    %23 = tpu.matmul %6, %22, %cst_14 {dimension_numbers = #tpu.dot_dimension_numbers<[1], [0], [0], [1], [0, 0, 1, 1], [], []>} : vector<256x256xf32>, vector<256x32xf32>, vector<256x32xf32> -> vector<256x32xf32>
    %24 = vector.broadcast %10 : vector<256x1xf32> to vector<256x32xf32>
    %25 = arith.divf %23, %24 : vector<256x32xf32>
    %c0_15 = arith.constant 0 : index
    %c0_16 = arith.constant 0 : index
    %26 = vector.load %arg5[%c0_15, %c0_16] : memref<32x16xf32, #tpu.memory_space<vmem>>, vector<32x16xf32>
    %cst_17 = arith.constant dense<0.000000e+00> : vector<256x16xf32>
    %27 = tpu.matmul %25, %26, %cst_17 {dimension_numbers = #tpu.dot_dimension_numbers<[1], [0], [0], [1], [0, 0, 1, 1], [], []>} : vector<256x32xf32>, vector<32x16xf32>, vector<256x16xf32> -> vector<256x16xf32>
    %c0_18 = arith.constant 0 : index
    %c0_19 = arith.constant 0 : index
    %28 = vector.load %arg6[%c0_18, %c0_19] : memref<1x16xf32, #tpu.memory_space<vmem>>, vector<1x16xf32>
    %29 = vector.broadcast %28 : vector<1x16xf32> to vector<256x16xf32>
    %30 = arith.addf %27, %29 : vector<256x16xf32>
    %cst_20 = arith.constant 0.000000e+00 : f32
    %31 = vector.broadcast %cst_20 : f32 to vector<256x16xf32>
    %32 = arith.maximumf %30, %31 : vector<256x16xf32>
    %c0_21 = arith.constant 0 : index
    %c0_22 = arith.constant 0 : index
    %33 = vector.load %arg7[%c0_21, %c0_22] : memref<32x128xf32, #tpu.memory_space<vmem>>, vector<32x128xf32>
    %cst_23 = arith.constant dense<0.000000e+00> : vector<256x128xf32>
    %34 = tpu.matmul %22, %33, %cst_23 {dimension_numbers = #tpu.dot_dimension_numbers<[1], [0], [0], [1], [0, 0, 1, 1], [], []>} : vector<256x32xf32>, vector<32x128xf32>, vector<256x128xf32> -> vector<256x128xf32>
    %c0_24 = arith.constant 0 : index
    %c0_25 = arith.constant 0 : index
    %35 = vector.load %arg8[%c0_24, %c0_25] : memref<16x128xf32, #tpu.memory_space<vmem>>, vector<16x128xf32>
    %cst_26 = arith.constant dense<0.000000e+00> : vector<256x128xf32>
    %36 = tpu.matmul %32, %35, %cst_26 {dimension_numbers = #tpu.dot_dimension_numbers<[1], [0], [0], [1], [0, 0, 1, 1], [], []>} : vector<256x16xf32>, vector<16x128xf32>, vector<256x128xf32> -> vector<256x128xf32>
    %37 = arith.addf %34, %36 : vector<256x128xf32>
    %c0_27 = arith.constant 0 : index
    %c0_28 = arith.constant 0 : index
    %38 = vector.load %arg9[%c0_27, %c0_28] : memref<1x128xf32, #tpu.memory_space<vmem>>, vector<1x128xf32>
    %39 = vector.broadcast %38 : vector<1x128xf32> to vector<256x128xf32>
    %40 = arith.addf %37, %39 : vector<256x128xf32>
    %c0_29 = arith.constant 0 : index
    %c0_30 = arith.constant 0 : index
    %41 = vector.load %arg10[%c0_29, %c0_30] : memref<256x128xf32, #tpu.memory_space<vmem>>, vector<256x128xf32>
    tpu.vector_store %arg10[%c0_29, %c0_30], %40 {strides = array<i32>} : memref<256x128xf32, #tpu.memory_space<vmem>>, vector<256x128xf32>,
    return
  }
  func.func @transform_0(%arg0: i32) -> (i32, i32, i32) {
    %c0_i32 = arith.constant 0 : i32
    %c0_i32_0 = arith.constant 0 : i32
    %c0_i32_1 = arith.constant 0 : i32
    return %arg0, %c0_i32, %c0_i32_0 : i32, i32, i32
  }
  func.func @transform_1(%arg0: i32) -> (i32, i32, i32) {
    %c0_i32 = arith.constant 0 : i32
    %c0_i32_0 = arith.constant 0 : i32
    %c0_i32_1 = arith.constant 0 : i32
    return %arg0, %c0_i32, %c0_i32_0 : i32, i32, i32
  }
  func.func @transform_2(%arg0: i32) -> (i32, i32) {
    %c0_i32 = arith.constant 0 : i32
    %c0_i32_0 = arith.constant 0 : i32
    %c0_i32_1 = arith.constant 0 : i32
    return %c0_i32, %c0_i32_0 : i32, i32
  }
  func.func @transform_3(%arg0: i32) -> (i32, i32) {
    %c0_i32 = arith.constant 0 : i32
    %c0_i32_0 = arith.constant 0 : i32
    %c0_i32_1 = arith.constant 0 : i32
    return %c0_i32, %c0_i32_0 : i32, i32
  }
  func.func @transform_4(%arg0: i32) -> (i32, i32) {
    %c0_i32 = arith.constant 0 : i32
    %c0_i32_0 = arith.constant 0 : i32
    %c0_i32_1 = arith.constant 0 : i32
    return %c0_i32, %c0_i32_0 : i32, i32
  }
  func.func @transform_5(%arg0: i32) -> (i32, i32) {
    %c0_i32 = arith.constant 0 : i32
    %c0_i32_0 = arith.constant 0 : i32
    %c0_i32_1 = arith.constant 0 : i32
    return %c0_i32, %c0_i32_0 : i32, i32
  }
  func.func @transform_6(%arg0: i32) -> (i32, i32) {
    %c0_i32 = arith.constant 0 : i32
    %c0_i32_0 = arith.constant 0 : i32
    %c0_i32_1 = arith.constant 0 : i32
    return %c0_i32, %c0_i32_0 : i32, i32
  }
  func.func @transform_7(%arg0: i32) -> (i32, i32) {
    %c0_i32 = arith.constant 0 : i32
    %c0_i32_0 = arith.constant 0 : i32
    %c0_i32_1 = arith.constant 0 : i32
    return %c0_i32, %c0_i32_0 : i32, i32
  }
  func.func @transform_8(%arg0: i32) -> (i32, i32) {
    %c0_i32 = arith.constant 0 : i32
    %c0_i32_0 = arith.constant 0 : i32
    %c0_i32_1 = arith.constant 0 : i32
    return %c0_i32, %c0_i32_0 : i32, i32
  }
  func.func @transform_9(%arg0: i32) -> (i32, i32) {
    %c0_i32 = arith.constant 0 : i32
    %c0_i32_0 = arith.constant 0 : i32
    return %arg0, %c0_i32 : i32, i32
  }
}

</mosaic_0001>

<bundles_post_ra>
// kernel: tpu_custom_call.1
= control target key start
LH: loop header
LB: loop body
LE: loop exit
PB: predicated region body
PF: predicated region fallthrough
CT: control target
= control target key end

     0   :  { %14 = vsyncpa [#allocation3], 0  ;;  %s5063_s0 = inlined_call_operand.vmem [shape: f32[2,256,8], index: 0, kind: input, shape index: {}]   ;;  %s5064_s1 = inlined_call_operand.hbm [shape: f32[2,256,256], index: 1, kind: input, shape index: {}]   ;;  %s5065_s2 = inlined_call_operand.vmem [shape: f32[8,32], index: 2, kind: input, shape index: {}]   ;;  %s5066_s3 = inlined_call_operand.vmem [shape: f32[1,32], index: 3, kind: input, shape index: {}]   ;;  %s5067_s4 = inlined_call_operand.vmem [shape: f32[32,16], index: 4, kind: input, shape index: {}]   ;;  %s5068_s5 = inlined_call_operand.vmem [shape: f32[1,16], index: 5, kind: input, shape index: {}]   ;;  %s5069_s6 = inlined_call_operand.vmem [shape: f32[32,128], index: 6, kind: input, shape index: {}]   ;;  %s5070_s7 = inlined_call_operand.vmem [shape: f32[16,128], index: 7, kind: input, shape index: {}]   ;;  %s5071_s8 = inlined_call_operand.vmem [shape: f32[1,128], index: 8, kind: input, shape index: {}]   ;;  %s5072_s9 = inlined_call_operand.hbm [shape: f32[512,128], index: 9, kind: output, shape index: {}]  }
   0x1   :  { %16 = vsyncpa [#allocation3 + $0x1], 0 }
   0x2   :  { %17 = vsyncpa [#allocation4], 0 }
   0x3   :  { %19 = vsyncpa [#allocation4 + $0x1], 0  ;;  %s3661_s30 = smov 0   ;;  %s3663_s10 = smov 0  }
   0x4   :  { %s3665_s11 = smov 0   ;;  %s3667_s12 = smov 0  }
   0x5 LB: > { %5151 = sst [smem:[#allocation8_spill]] %s3598_s11  ;;  %s3682_s13 = sadd.s32 4294967295, %s3602_s12   ;;  %s3602_s12 = sphi %s3667_s12, %s5282_s12   ;;  %s3598_s11 = sphi %s3665_s11, %s5279_s11   ;;  %s3594_s10 = sphi %s3663_s10, %s5281_s10   ;;  %s3590_s30 = sphi %s3661_s30, %s5280_s30  }
   0x6   : > { %s2852_s14 = sadd.s32 4294967294, %s3602_s12   ;;  %s3686_s15 = sadd.s32 1, %s3602_s12  }
   0x7   : > { %s58_s16 = sadd.s32 1, %s3598_s11  ;;  %s55_s17 = ssub.s32 %s3602_s12, %s3686_s15 }
   0x8   : > { %p65_p0 = scmp.ne.s32.totalorder %s3598_s11, %s3594_s10  ;;  %p56_p1 = scmp.eq.s32.totalorder %s55_s17, 0 }
   0x9   : > { %p66_p2 = scmp.eq.s32.totalorder %s3602_s12, 0  ;;  %p71_p3 = scmp.ne.s32.totalorder %s3594_s10, %s3590_s30 }
   0xa   : > { %p72_p4 = scmp.eq.s32.totalorder %s3682_s13, 0  ;;  %p242_p7 = scmp.eq.s32.totalorder %s3682_s13, 1 }
   0xb   : > { %s3698_s18 = scalar_select %p56_p1, %s3598_s11, %s58_s16  }
   0xc   : > { %p3700_p5 = por %p66_p2, %p65_p0  ;;  %p3704_p6 = por %p72_p4, %p71_p3 }
   0xd   : > { %5152 = sst [smem:[#allocation9_spill]] %s3698_s18  ;;  %p248_p8 = scmp.eq.s32.totalorder %s2852_s14, 1 }
   0xe   : > { %s5154_s20 = scalar_select %p3704_p6, 1, 0 }
   0xf   : > { %p3375_p10 = scmp.lt.s32.totalorder %s3602_s12, 2  ;;  %p3711_p11 = por %p242_p7, %p65_p0 }
  0x10   : > { %p3715_p12 = por %p248_p8, %p71_p3  ;;  %s297_s23 = sand.u32 1, %s3598_s11  }
  0x11   : > { %s5155_s21 = scalar_select %p3711_p11, 1, 0 }
  0x12   : > { %s5156_s22 = scalar_select %p3715_p12, 1, 0 }
  0x13   : > { %s2999_s24 = sshll.u32 %s3602_s12, 13  ;;  %s2855_s25 = sshll.u32 %s297_s23, 9 }
  0x14   : > { %s3724_s28 = scalar_lea.hbm %s5064_s1, %s2999_s24  ;;  %s301_s29 = scalar_lea.vmem [#allocation2], %s2855_s25 }
  0x15   : > { %s308_s14 = sshll.u32 %s301_s29, 4  ;;  %p3728_p13 = pnand %p3375_p10, %p3700_p5  ;;  %s3732_s14 = int_to_ptr.vmem [resolvable:$true] %s308_s14 }
  0x16   : > { %s3734_s17 = scalar_lea.sflag [#allocation3], %s297_s23  ;;  %s3510_s18 = scalar_lea.hbm %s3724_s28, 8192 }
  0x17   : > { %p3511_p0 = scmp.ne.s32.totalorder %s3724_s28, %s3510_s18  ;;  %p3512_p1 = pneg %p3728_p13 }
  0x18   : > { %s3515_s25 = scalar_lea.hbm %s5064_s1, 16384  ;;  %p3516_p4 = scmp.lt.s32.totalorder %s3724_s28, %s5064_s1 }
  0x19   : > { %p3513_p2 = pnand %p3512_p1, %p3511_p0  ;;  %p3517_p5 = scmp.lt.s32.totalorder %s3515_s25, %s3510_s18 }
  0x1b   : > { %p3514_p3 = pneg %p3513_p2  ;;  %p3518_p7 = por %p3517_p5, %p3516_p4 }
  0x1d   : > { %p3519_p8 = pnand %p3518_p7, %p3514_p3 }
  0x1f   : > { %3522 = shalt.err (!%p3519_p8)
}
  0x20   : > { %s3523_s23 = scalar_lea.vmem %s3732_s14, 8192  ;;  %s3604_s29 = smov [#allocation2]  }
  0x21   : > { %p3524_p10 = scmp.ne.s32.totalorder %s3732_s14, %s3523_s23  ;;  %s3528_s11 = sshll.u32 %s3604_s29, 4  ;;  %s3529_s11 = int_to_ptr.vmem [resolvable:$false] %s3528_s11 }
  0x22   : > { %s3530_s24 = scalar_lea.vmem %s3529_s11, 16384  ;;  %p3531_p2 = scmp.lt.s32.totalorder %s3732_s14, %s3529_s11 }
  0x23   : > { %p3526_p9 = pnand %p3524_p10, %p3512_p1  ;;  %p3532_p12 = scmp.lt.s32.totalorder %s3530_s24, %s3523_s23 }
  0x25   : > { %p3527_p0 = pneg %p3526_p9  ;;  %p3533_p11 = por %p3532_p12, %p3531_p2 }
  0x27   : > { %p3534_p6 = pnand %p3533_p11, %p3527_p0 }
  0x29   : > { %3537 = shalt.err (!%p3534_p6)
}
  0x2a   : > { %s3605_s18 = smov 256   ;;  %s3606_s26 = smov 16  }
  0x2b   : > { %3370 = dma.hbm_to_vmem [thread:$0]  (!%p3728_p13), %s3724_s28, 8192, %s3732_s14, %s3734_s17, %s3605_s18, %s3605_s18, %s3606_s26  }
  0x2c   : > { %p2858_p9 = scmp.ge.s32.totalorder %s3602_s12, 1  ;;  %p316_p1 = scmp.lt.s32.totalorder %s3602_s12, 3 }
  0x2e   : > { %p317_p3 = pnand %p2858_p9, %p316_p1 }
  0x30   : > { %320 = sbr.rel (%p317_p3) target bundleno = 1406 (0x57e), region = 56 }
  0x35   : > { %s3758_s11 = sand.u32 1, %s3594_s10   ;;  %p5158_p6 = scmp.ne.s32.totalorder %s5154_s20, 0 }
  0x36   : > { %s2859_s25 = sshll.u32 %s3758_s11, 9  ;;  %s323_s19 = scalar_lea.sflag [#allocation3], %s3758_s11 }
  0x37   : > { %s3762_s27 = scalar_lea.vmem [#allocation2], %s2859_s25 }
  0x38   : > { %3581 = dma.done.wait (%p5158_p6), %s323_s19, 8192  }
  0x39   : > { %3583 = vsyncadd (%p5158_p6), %s323_s19, 4294959104  ;;  %p366_p11 = scmp.lt.s32.totalorder %s3682_s13, 1  ;;  %v5077_v0 = vmov 0.0   ;;  %v372_v3 = vlaneseq  ;;  %v473_v14 = vld [vmem:[%s3762_s27 + $0x8] sm:$0xff]  ;;  %v472_v15 = vld [vmem:[%s3762_s27] sm:$0xff]  ;;  %s2860_s29 = sshll.u32 %s3758_s11, 8 }
  0x3a   : > { %760 = vmatprep.subr.mxu0 %v5077_v0  ;;  %824 = vmatprep.mubr.f32.mxu0 %v473_v14  ;;  %v474_v16 = vld [vmem:[%s3762_s27 + $0x10] sm:$0xff]  ;;  %v476_v20 = vld [vmem:[%s3762_s27 + $0x20] sm:$0xff]  ;;  %v3811_v22 = vld [vmem:[%s3762_s27 + $0x28] sm:$0xff]  ;;  %s3001_s26 = sshll.u32 %s3682_s13, 12  ;;  %p5275_p13 = scmp.ne.s32.totalorder %s5155_s21, 0 }
  0x3b   : > { %s367_s28 = scalar_select %p366_p11, %s3682_s13, 1  ;;  %v3782_v6 = vshrl.u32 %v372_v3, 7  ;;  %v3784_v7 = vand.u32 127, %v372_v3  ;;  %v478_v24 = vld [vmem:[%s3762_s27 + $0x30] sm:$0xff]  ;;  %v3820_v27 = vld [vmem:[%s3762_s27 + $0x18] sm:$0xff]  ;;  %v480_v32 = vld [vmem:[%s3762_s27 + $0x40] sm:$0xff] }
  0x3c   : > { %v3829_v30 = vld [vmem:[%s3762_s27 + $0x38] sm:$0xff]  ;;  %v482_v36 = vld [vmem:[%s3762_s27 + $0x50] sm:$0xff]  ;;  %v3848_v40 = vld [vmem:[%s3762_s27 + $0x48] sm:$0xff]  ;;  %s2754_s13 = scalar_lea.sflag [#allocation4], %s3758_s11  ;;  %s3608_s17 = smov [#allocation5]  }
  0x3d   : > { %s3000_s14 = sshll.u32 %s367_s28, 8  ;;  %v375_v9 = vadd.s32 16, %v3782_v6  ;;  %v374_v10 = vadd.s32 8, %v3782_v6  ;;  %v376_v12 = vadd.s32 24, %v3782_v6  ;;  %vm408_vm0 = vcmp.eq.s32.totalorder %v3782_v6, %v3784_v7  ;;  %v3855_v42 = vld [vmem:[%s3762_s27 + $0x58] sm:$0xff]  ;;  %v484_v44 = vld [vmem:[%s3762_s27 + $0x60] sm:$0xff] }
  0x3e   : > { %s3774_s23 = scalar_lea.vmem %s5063_s0, %s3000_s14  ;;  %v377_v17 = vadd.s32 32, %v3782_v6  ;;  %v3805_v19 = vsel %vm408_vm0, 1.0, %v472_v15  ;;  %v378_v21 = vadd.s32 40, %v3782_v6  ;;  %v379_v33 = vadd.s32 48, %v3782_v6  ;;  %v486_v48 = vld [vmem:[%s3762_s27 + $0x70] sm:$0xff]  ;;  %v3874_v52 = vld [vmem:[%s3762_s27 + $0x68] sm:$0xff]  ;;  %s5015_s14 = scalar_lea.hbm %s5072_s9, %s3001_s26 }
  0x3f   : > { %v743_v1 = vld [vmem:[%s3774_s23 + $0x78] sm:$0xff]  ;;  %v742_v2 = vld [vmem:[%s3774_s23 + $0x70] sm:$0xff]  ;;  %v741_v4 = vld [vmem:[%s3774_s23 + $0x68] sm:$0xff]  ;;  %vm412_vm1 = vcmp.eq.s32.totalorder %v375_v9, %v3784_v7  ;;  %vm410_vm2 = vcmp.eq.s32.totalorder %v374_v10, %v3784_v7  ;;  %5159 = vst [vmem:[#allocation10_spill] sm:$0xff] %v3805_v19  ;;  %vm414_vm3 = vcmp.eq.s32.totalorder %v376_v12, %v3784_v7  ;;  %v600_v25 = vadd.f32 %v3805_v19, %v473_v14 }
  0x40   : > { %761 = vmatpush1.msra.mxu0 %v743_v1  ;;  %v740_v5 = vld [vmem:[%s3774_s23 + $0x60] sm:$0xff]  ;;  %v739_v8 = vld [vmem:[%s3774_s23 + $0x58] sm:$0xff]  ;;  %v738_v11 = vld [vmem:[%s3774_s23 + $0x50] sm:$0xff]  ;;  %v3813_v23 = vsel %vm412_vm1, 1.0, %v476_v20  ;;  %v3824_v28 = vsel %vm410_vm2, 1.0, %v474_v16  ;;  %v3831_v31 = vsel %vm414_vm3, 1.0, %v478_v24  ;;  %vm416_vm4 = vcmp.eq.s32.totalorder %v377_v17, %v3784_v7 }
  0x41   : > { %762 = vmatprep.subr.mxu0 %v5077_v0  ;;  %v737_v13 = vld [vmem:[%s3774_s23 + $0x48] sm:$0xff]  ;;  %v736_v18 = vld [vmem:[%s3774_s23 + $0x40] sm:$0xff]  ;;  %v735_v26 = vld [vmem:[%s3774_s23 + $0x38] sm:$0xff]  ;;  %5160 = vst [vmem:[#allocation11_spill] sm:$0xff] %v3824_v28  ;;  %v606_v29 = vadd.f32 %v3813_v23, %v3811_v22  ;;  %601 = vadd.xlane.f32.xlu0 %v600_v25  ;;  %v603_v34 = vadd.f32 %v3824_v28, %v3820_v27  ;;  %v380_v37 = vadd.s32 56, %v3782_v6  ;;  %v3852_v41 = vsel %vm416_vm4, 1.0, %v480_v32 }
  0x42   : > { %763 = vmatpush1.msra.mxu0 %v742_v2  ;;  %v734_v35 = vld [vmem:[%s3774_s23 + $0x30] sm:$0xff]  ;;  %vm418_vm5 = vcmp.eq.s32.totalorder %v378_v21, %v3784_v7  ;;  %v609_v38 = vadd.f32 %v3831_v31, %v3829_v30  ;;  %v733_v39 = vld [vmem:[%s3774_s23 + $0x28] sm:$0xff]  ;;  %vm420_vm6 = vcmp.eq.s32.totalorder %v379_v33, %v3784_v7  ;;  %v381_v45 = vadd.s32 64, %v3782_v6  ;;  %v732_v47 = vld [vmem:[%s3774_s23 + $0x20] sm:$0xff] }
  0x43   : > { %764 = vmatprep.subr.mxu0 %v5077_v0  ;;  %607 = vadd.xlane.f32.xlu1 %v606_v29  ;;  %v3857_v43 = vsel %vm418_vm5, 1.0, %v482_v36  ;;  %v612_v46 = vadd.f32 %v3852_v41, %v3848_v40  ;;  %vm422_vm7 = vcmp.eq.s32.totalorder %v380_v37, %v3784_v7  ;;  %v382_v49 = vadd.s32 72, %v3782_v6  ;;  %v731_v51 = vld [vmem:[%s3774_s23 + $0x18] sm:$0xff]  ;;  %v488_v56 = vld [vmem:[%s3762_s27 + $0x80] sm:$0xff]  ;;  %v730_v59 = vld [vmem:[%s3774_s23 + $0x10] sm:$0xff] }
  0x44   : > { %765 = vmatpush1.msra.mxu0 %v741_v4  ;;  %v615_v50 = vadd.f32 %v3857_v43, %v3855_v42  ;;  %v3878_v53 = vsel %vm420_vm6, 1.0, %v484_v44  ;;  %v3881_v54 = vld [vmem:[%s3762_s27 + $0x78] sm:$0xff]  ;;  %v3883_v55 = vsel %vm422_vm7, 1.0, %v486_v48  ;;  %vm424_vm8 = vcmp.eq.s32.totalorder %v381_v45, %v3784_v7  ;;  %v490_v60 = vld [vmem:[%s3762_s27 + $0x90] sm:$0xff]  ;;  %v729_v63 = vld [vmem:[%s3774_s23 + $0x8] sm:$0xff] }
  0x45   : > { %766 = vmatprep.subr.mxu0 %v5077_v0  ;;  %604 = vadd.xlane.f32.xlu0 %v603_v34  ;;  %v383_v57 = vadd.s32 80, %v3782_v6  ;;  %v618_v58 = vadd.f32 %v3878_v53, %v3874_v52  ;;  %vm426_vm9 = vcmp.eq.s32.totalorder %v382_v49, %v3784_v7  ;;  %v384_v61 = vadd.s32 88, %v3782_v6  ;;  %v3900_v1 = vld [vmem:[%s3762_s27 + $0x88] sm:$0xff]  ;;  %v3907_v3 = vld [vmem:[%s3762_s27 + $0x98] sm:$0xff]  ;;  %v728_v10 = vld [vmem:[%s3774_s23] sm:$0xff] }
  0x46   : > { %767 = vmatpush1.msra.mxu0 %v740_v5  ;;  %v621_v62 = vadd.f32 %v3883_v55, %v3881_v54  ;;  %v3904_v2 = vsel %vm424_vm8, 1.0, %v488_v56  ;;  %v3909_v4 = vsel %vm426_vm9, 1.0, %v490_v60  ;;  %v492_v5 = vld [vmem:[%s3762_s27 + $0xa0] sm:$0xff]  ;;  %v386_v12 = vadd.s32 104, %v3782_v6  ;;  %v759_v14 = vld [vmem:[%s3774_s23 + $0xf8] sm:$0xff]  ;;  %v3926_v15 = vld [vmem:[%s3762_s27 + $0xa8] sm:$0xff] }
  0x47   : > { %768 = vmatprep.subr.mxu0 %v5077_v0  ;;  %610 = vadd.xlane.f32.xlu1 %v609_v38  ;;  %vm428_vm10 = vcmp.eq.s32.totalorder %v383_v57, %v3784_v7  ;;  %v624_v9 = vadd.f32 %v3904_v2, %v3900_v1  ;;  %vm430_vm11 = vcmp.eq.s32.totalorder %v384_v61, %v3784_v7  ;;  %v387_v17 = vadd.s32 112, %v3782_v6  ;;  %v496_v21 = vld [vmem:[%s3762_s27 + $0xc0] sm:$0xff]  ;;  %v758_v25 = vld [vmem:[%s3774_s23 + $0xf0] sm:$0xff]  ;;  %v757_v33 = vld [vmem:[%s3774_s23 + $0xe8] sm:$0xff] }
  0x48   : > { %769 = vmatpush1.msra.mxu0 %v739_v8  ;;  %v385_v8 = vadd.s32 96, %v3782_v6  ;;  %v3930_v16 = vsel %vm428_vm10, 1.0, %v492_v5  ;;  %vm434_vm13 = vcmp.eq.s32.totalorder %v386_v12, %v3784_v7  ;;  %v388_v29 = vadd.s32 120, %v3782_v6  ;;  %v3952_v34 = vld [vmem:[%s3762_s27 + $0xc8] sm:$0xff]  ;;  %v3958_v36 = vld [vmem:[%s3762_s27 + $0xd8] sm:$0xff]  ;;  %v500_v38 = vld [vmem:[%s3762_s27 + $0xe0] sm:$0xff] }
  0x49   : > { %770 = vmatprep.subr.mxu0 %v5077_v0  ;;  %613 = vadd.xlane.f32.xlu0 %v612_v46  ;;  %v630_v24 = vadd.f32 %v3930_v16, %v3926_v15  ;;  %vm436_vm14 = vcmp.eq.s32.totalorder %v387_v17, %v3784_v7  ;;  %v3965_v44 = vadd.s32 128, %v3784_v7  ;;  %v756_v46 = vld [vmem:[%s3774_s23 + $0xe0] sm:$0xff]  ;;  %v390_v48 = vadd.s32 136, %v3782_v6  ;;  %v3986_v57 = vld [vmem:[%s3762_s27 + $0xf8] sm:$0xff]  ;;  %v4012_v12 = vld [vmem:[%s3762_s27 + $0x110] sm:$0xff] }
  0x4a   : > { %771 = vmatpush1.msra.mxu0 %v738_v11  ;;  %v494_v11 = vld [vmem:[%s3762_s27 + $0xb0] sm:$0xff]  ;;  %vm432_vm12 = vcmp.eq.s32.totalorder %v385_v8, %v3784_v7  ;;  %vm438_vm15 = vcmp.eq.s32.totalorder %v388_v29, %v3784_v7  ;;  %v3983_v56 = vsel %vm436_vm14, 1.0, %v500_v38  ;;  %v391_v60 = vadd.s32 144, %v3782_v6  ;;  %v753_v8 = vld [vmem:[%s3774_s23 + $0xc8] sm:$0xff]  ;;  %v752_v17 = vld [vmem:[%s3774_s23 + $0xc0] sm:$0xff] }
  0x4b   : > { %772 = vmatprep.subr.mxu0 %v5077_v0  ;;  %616 = vadd.xlane.f32.xlu1 %v615_v50  ;;  %v3936_v20 = vsel %vm430_vm11, 1.0, %v494_v11  ;;  %v755_v50 = vld [vmem:[%s3774_s23 + $0xd8] sm:$0xff]  ;;  %v754_v7 = vld [vmem:[%s3774_s23 + $0xd0] sm:$0xff]  ;;  %vm443_vm1 = vcmp.eq.s32.totalorder %v390_v48, %v3965_v44  ;;  %v513_v48 = vld [vmem:[%s3762_s27 + $0x148] sm:$0xff] }
  0x4c   : > { %773 = vmatpush1.msra.mxu0 %v737_v13  ;;  %v627_v13 = vadd.f32 %v3909_v4, %v3907_v3  ;;  %vm445_vm2 = vcmp.eq.s32.totalorder %v391_v60, %v3965_v44  ;;  %v4035_v38 = vld [vmem:[%s3762_s27 + $0x130] sm:$0xff]  ;;  %v4053_v60 = vld [vmem:[%s3762_s27 + $0x140] sm:$0xff] }
  0x4d   : > { %774 = vmatprep.subr.mxu0 %v5077_v0  ;;  %619 = vadd.xlane.f32.xlu0 %v618_v58 }
  0x4e   : > { %775 = vmatpush1.msra.mxu0 %v736_v18  ;;  %v3934_v18 = vld [vmem:[%s3762_s27 + $0xb8] sm:$0xff] }
  0x4f   : > { %776 = vmatprep.subr.mxu0 %v5077_v0  ;;  %622 = vadd.xlane.f32.xlu1 %v621_v62  ;;  %v633_v32 = vadd.f32 %v3936_v20, %v3934_v18  ;;  %v507_v62 = vld [vmem:[%s3762_s27 + $0x118] sm:$0xff] }
  0x50   : > { %777 = vmatpush1.msra.mxu0 %v735_v26  ;;  %v498_v26 = vld [vmem:[%s3762_s27 + $0xd0] sm:$0xff]  ;;  %v4009_v11 = vsel %vm443_vm1, 1.0, %v507_v62  ;;  %v396_v62 = vadd.s32 184, %v3782_v6  ;;  %vm1679_vm1 = vcmask 261120  }
  0x51   : > { %778 = vmatprep.subr.mxu0 %v5077_v0  ;;  %625 = vadd.xlane.f32.xlu0 %v624_v9  ;;  %v3960_v37 = vsel %vm434_vm13, 1.0, %v498_v26  ;;  %v751_v26 = vld [vmem:[%s3774_s23 + $0xb8] sm:$0xff] }
  0x52   : > { %779 = vmatpush1.msra.mxu0 %v734_v35  ;;  %v3954_v35 = vsel %vm432_vm12, 1.0, %v496_v21  ;;  %v639_v49 = vadd.f32 %v3960_v37, %v3958_v36  ;;  %v511_v21 = vld [vmem:[%s3762_s27 + $0x138] sm:$0xff]  ;;  %vm455_vm7 = vcmp.eq.s32.totalorder %v396_v62, %v3965_v44  ;;  %v744_v62 = vld [vmem:[%s3774_s23 + $0x80] sm:$0xff] }
  0x53   : > { %780 = vmatprep.subr.mxu0 %v5077_v0  ;;  %628 = vadd.xlane.f32.xlu1 %v627_v13  ;;  %v636_v45 = vadd.f32 %v3954_v35, %v3952_v34  ;;  %v509_v13 = vld [vmem:[%s3762_s27 + $0x128] sm:$0xff] }
  0x54   : > { %781 = vmatpush1.msra.mxu0 %v733_v39  ;;  %v389_v39 = vadd.s32 128, %v3782_v6  ;;  %v4027_v29 = vsel %vm445_vm2, 1.0, %v509_v13  ;;  %vm2039_vm2 = vcmask 130048  }
  0x55   : > { %782 = vmatprep.subr.mxu0 %v5077_v0  ;;  %631 = vadd.xlane.f32.xlu0 %v630_v24  ;;  %v651_v24 = vadd.f32 %v4009_v11, %v4012_v12 }
  0x56   : > { %783 = vmatpush1.msra.mxu0 %v732_v47  ;;  %v502_v47 = vld [vmem:[%s3762_s27 + $0xf0] sm:$0xff]  ;;  %vm441_vm0 = vcmp.eq.s32.totalorder %v389_v39, %v3965_v44 }
  0x57   : > { %784 = vmatprep.subr.mxu0 %v5077_v0  ;;  %634 = vadd.xlane.f32.xlu1 %v633_v32  ;;  %v3988_v58 = vsel %vm438_vm15, 1.0, %v502_v47  ;;  %v4030_v32 = vld [vmem:[%s3762_s27 + $0x120] sm:$0xff] }
  0x58   : > { %785 = vmatpush1.msra.mxu0 %v731_v51  ;;  %v3979_v51 = vld [vmem:[%s3762_s27 + $0xe8] sm:$0xff]  ;;  %v645_v5 = vadd.f32 %v3988_v58, %v3986_v57  ;;  %v654_v39 = vadd.f32 %v4027_v29, %v4030_v32 }
  0x59   : > { %786 = vmatprep.subr.mxu0 %v5077_v0  ;;  %637 = vadd.xlane.f32.xlu0 %v636_v45  ;;  %v642_v61 = vadd.f32 %v3983_v56, %v3979_v51  ;;  %v750_v45 = vld [vmem:[%s3774_s23 + $0xb0] sm:$0xff] }
  0x5a   : > { %787 = vmatpush1.msra.mxu0 %v730_v59  ;;  %v505_v59 = vld [vmem:[%s3762_s27 + $0x108] sm:$0xff] }
  0x5b   : > { %788 = vmatprep.subr.mxu0 %v5077_v0  ;;  %640 = vadd.xlane.f32.xlu1 %v639_v49  ;;  %v4004_v9 = vsel %vm441_vm0, 1.0, %v505_v59  ;;  %v749_v49 = vld [vmem:[%s3774_s23 + $0xa8] sm:$0xff]  ;;  %vm1057_vm0 = vcmask 64512  }
  0x5c   : > { %789 = vmatpush1.msra.mxu0 %v729_v63  ;;  %v392_v63 = vadd.s32 152, %v3782_v6 }
  0x5d   : > { %790 = vmatprep.subr.mxu0 %v5077_v0  ;;  %643 = vadd.xlane.f32.xlu0 %v642_v61  ;;  %v515_v61 = vld [vmem:[%s3762_s27 + $0x158] sm:$0xff] }
  0x5e   : > { %791 = vmatpush1.msra.mxu0 %v728_v10  ;;  %v4007_v10 = vld [vmem:[%s3762_s27 + $0x100] sm:$0xff]  ;;  %vm447_vm3 = vcmp.eq.s32.totalorder %v392_v63, %v3965_v44 }
  0x5f   : > { %792 = vmatprep.subr.mxu0 %v5077_v0  ;;  %646 = vadd.xlane.f32.xlu1 %v645_v5  ;;  %v747_v5 = vld [vmem:[%s3774_s23 + $0x98] sm:$0xff] }
  0x60   : > { %793 = vmatpush2.msra.mxu0 %v759_v14  ;;  %v648_v14 = vadd.f32 %v4004_v9, %v4007_v10 }
  0x61   : > { %794 = vmatprep.subr.mxu0 %v5077_v0 }
  0x62   : > { %795 = vmatpush2.msra.mxu0 %v758_v25  ;;  %v393_v25 = vadd.s32 160, %v3782_v6  ;;  %649 = vadd.xlane.f32.xlu0 %v648_v14  ;;  %v4067_v14 = vld [vmem:[%s3762_s27 + $0x150] sm:$0xff] }
  0x63   : > { %796 = vmatprep.subr.mxu0 %v5077_v0  ;;  %652 = vadd.xlane.f32.xlu1 %v651_v24  ;;  %v517_v24 = vld [vmem:[%s3762_s27 + $0x168] sm:$0xff] }
  0x64   : > { %797 = vmatpush2.msra.mxu0 %v757_v33  ;;  %v4032_v33 = vsel %vm447_vm3, 1.0, %v511_v21  ;;  %vm449_vm4 = vcmp.eq.s32.totalorder %v393_v25, %v3965_v44  ;;  %v746_v21 = vld [vmem:[%s3774_s23 + $0x90] sm:$0xff]  ;;  %v519_v25 = vld [vmem:[%s3762_s27 + $0x178] sm:$0xff] }
  0x65   : > { %798 = vmatprep.subr.mxu0 %v5077_v0  ;;  %v657_v47 = vadd.f32 %v4032_v33, %v4035_v38  ;;  %v4050_v59 = vsel %vm449_vm4, 1.0, %v513_v48  ;;  %v4086_v48 = vld [vmem:[%s3762_s27 + $0x160] sm:$0xff] }
  0x66   : > { %799 = vmatpush2.msra.mxu0 %v756_v46  ;;  %v394_v46 = vadd.s32 168, %v3782_v6  ;;  %655 = vadd.xlane.f32.xlu0 %v654_v39  ;;  %v660_v63 = vadd.f32 %v4050_v59, %v4053_v60  ;;  %v745_v39 = vld [vmem:[%s3774_s23 + $0x88] sm:$0xff] }
  0x67   : > { %800 = vmatprep.subr.mxu0 %v5077_v0  ;;  %658 = vadd.xlane.f32.xlu1 %v657_v47 }
  0x68   : > { %801 = vmatpush2.msra.mxu0 %v755_v50  ;;  %v748_v50 = vld [vmem:[%s3774_s23 + $0xa0] sm:$0xff]  ;;  %vm451_vm5 = vcmp.eq.s32.totalorder %v394_v46, %v3965_v44  ;;  %v399_v46 = vadd.s32 208, %v3782_v6  ;;  %s3542_s23 = sshll.u32 %s3608_s17, 4  ;;  %s3543_s23 = int_to_ptr.vmem [resolvable:$false] %s3542_s23 }
  0x69   : > { %802 = vmatprep.subr.mxu0 %v5077_v0  ;;  %v4064_v13 = vsel %vm451_vm5, 1.0, %v515_v61  ;;  %v523_v61 = vld [vmem:[%s3762_s27 + $0x198] sm:$0xff]  ;;  %s3544_s20 = scalar_lea.vmem %s3543_s23, 8192 }
  0x6a   : > { %803 = vmatpush2.msra.mxu0 %v754_v7  ;;  %v395_v7 = vadd.s32 176, %v3782_v6  ;;  %661 = vadd.xlane.f32.xlu0 %v660_v63  ;;  %vm461_vm10 = vcmp.eq.s32.totalorder %v399_v46, %v3965_v44 }
  0x6b   : > { %804 = vmatprep.subr.mxu0 %v5077_v0 }
  0x6c   : > { %805 = vmatpush2.msra.mxu0 %v753_v8  ;;  %v397_v8 = vadd.s32 192, %v3782_v6  ;;  %vm453_vm6 = vcmp.eq.s32.totalorder %v395_v7, %v3965_v44  ;;  %v400_v7 = vadd.s32 216, %v3782_v6 }
  0x6d   : > { %806 = vmatprep.subr.mxu0 %v5077_v0  ;;  %v4083_v47 = vsel %vm453_vm6, 1.0, %v517_v24  ;;  %v4107_v24 = vld [vmem:[%s3762_s27 + $0x180] sm:$0xff] }
  0x6e   : > { %807 = vmatpush2.msra.mxu0 %v752_v17  ;;  %v398_v17 = vadd.s32 200, %v3782_v6  ;;  %vm457_vm8 = vcmp.eq.s32.totalorder %v397_v8, %v3965_v44  ;;  %v666_v63 = vadd.f32 %v4083_v47, %v4086_v48  ;;  %vm463_vm11 = vcmp.eq.s32.totalorder %v400_v7, %v3965_v44  ;;  %v4135_v7 = vld [vmem:[%s3762_s27 + $0x1b0] sm:$0xff] }
  0x6f   : > { %808 = vmatprep.subr.mxu0 %v5077_v0 }
  0x70   : > { %809 = vmatpush2.msra.mxu0 %v751_v26  ;;  %v663_v26 = vadd.f32 %v4064_v13, %v4067_v14  ;;  %vm459_vm9 = vcmp.eq.s32.totalorder %v398_v17, %v3965_v44  ;;  %667 = vadd.xlane.f32.xlu0 %v666_v63  ;;  %v4130_v63 = vld [vmem:[%s3762_s27 + $0x1a0] sm:$0xff] }
  0x71   : > { %810 = vmatprep.subr.mxu0 %v5077_v0  ;;  %v4110_v17 = vsel %vm459_vm9, 1.0, %v523_v61  ;;  %5162 = vst [vmem:[#allocation13_spill] sm:$0xff] %v4130_v63 }
  0x72   : > { %811 = vmatpush2.msra.mxu0 %v750_v45  ;;  %v521_v45 = vld [vmem:[%s3762_s27 + $0x188] sm:$0xff]  ;;  %664 = vadd.xlane.f32.xlu1 %v663_v26 }
  0x73   : > { %812 = vmatprep.subr.mxu0 %v5077_v0  ;;  %v525_v26 = vld [vmem:[%s3762_s27 + $0x1a8] sm:$0xff] }
  0x74   : > { %813 = vmatpush2.msra.mxu0 %v749_v49  ;;  %v4088_v49 = vsel %vm455_vm7, 1.0, %v519_v25  ;;  %v4113_v25 = vld [vmem:[%s3762_s27 + $0x190] sm:$0xff]  ;;  %v4127_v61 = vsel %vm461_vm10, 1.0, %v525_v26  ;;  %v531_v26 = vld [vmem:[%s3762_s27 + $0x1d8] sm:$0xff] }
  0x75   : > { %814 = vmatprep.subr.mxu0 %v5077_v0  ;;  %v675_v46 = vadd.f32 %v4110_v17, %v4113_v25 }
  0x76   : > { %815 = vmatpush2.msra.mxu0 %v748_v50  ;;  %v4091_v50 = vld [vmem:[%s3762_s27 + $0x170] sm:$0xff] }
  0x77   : > { %816 = vmatprep.subr.mxu0 %v5077_v0  ;;  %5161 = vst [vmem:[#allocation12_spill] sm:$0xff] %v4091_v50 }
  0x78   : > { %817 = vmatpush2.msra.mxu0 %v747_v5  ;;  %v669_v5 = vadd.f32 %v4088_v49, %v4091_v50  ;;  %v401_v50 = vadd.s32 224, %v3782_v6 }
  0x79   : > { %818 = vmatprep.subr.mxu0 %v5077_v0 }
  0x7a   : > { %819 = vmatpush2.msra.mxu0 %v746_v21  ;;  %v4104_v21 = vsel %vm457_vm8, 1.0, %v521_v45  ;;  %v402_v45 = vadd.s32 232, %v3782_v6  ;;  %670 = vadd.xlane.f32.xlu1 %v669_v5  ;;  %vm465_vm12 = vcmp.eq.s32.totalorder %v401_v50, %v3965_v44  ;;  %v529_v5 = vld [vmem:[%s3762_s27 + $0x1c8] sm:$0xff] }
  0x7b   : > { %820 = vmatprep.subr.mxu0 %v5077_v0  ;;  %v672_v8 = vadd.f32 %v4104_v21, %v4107_v24  ;;  %v4149_v50 = vsel %vm465_vm12, 1.0, %v529_v5 }
  0x7c   : > { %821 = vmatpush2.msra.mxu0 %v745_v39  ;;  %v527_v39 = vld [vmem:[%s3762_s27 + $0x1b8] sm:$0xff]  ;;  %vm467_vm13 = vcmp.eq.s32.totalorder %v402_v45, %v3965_v44  ;;  %v4157_v45 = vld [vmem:[%s3762_s27 + $0x1d0] sm:$0xff] }
  0x7d   : > { %822 = vmatprep.subr.mxu0 %v5077_v0  ;;  %v403_v0 = vadd.s32 240, %v3782_v6  ;;  %673 = vadd.xlane.f32.xlu0 %v672_v8  ;;  %v4152_v8 = vld [vmem:[%s3762_s27 + $0x1c0] sm:$0xff] }
  0x7e   : > { %823 = vmatpush2.msra.mxu0 %v744_v62  ;;  %v4132_v62 = vsel %vm463_vm11, 1.0, %v527_v39  ;;  %v404_v39 = vadd.s32 248, %v3782_v6  ;;  %676 = vadd.xlane.f32.xlu1 %v675_v46  ;;  %v533_v6 = vld [vmem:[%s3762_s27 + $0x1e8] sm:$0xff]  ;;  %v684_v46 = vadd.f32 %v4149_v50, %v4152_v8 }
  0x7f   : > { %825 = vmatmul.mubr.f32.vlgmr.msra.gmra.mxu0 %v3805_v19  ;;  %v681_v19 = vadd.f32 %v4132_v62, %v4135_v7  ;;  %vm469_vm14 = vcmp.eq.s32.totalorder %v403_v0, %v3965_v44 }
  0x80   : > { %829 = vmatprep.mubr.f32.mxu0 %v3820_v27  ;;  %v678_v27 = vadd.f32 %v4127_v61, %v4130_v63  ;;  %v4154_v63 = vsel %vm467_vm13, 1.0, %v531_v26  ;;  %vm471_vm15 = vcmp.eq.s32.totalorder %v404_v39, %v3965_v44  ;;  %v4169_v26 = vsel %vm469_vm14, 1.0, %v533_v6 }
  0x81   : > { %v687_v5 = vadd.f32 %v4154_v63, %v4157_v45 }
  0x82   : > { %679 = vadd.xlane.f32.xlu0 %v678_v27  ;;  %682 = vadd.xlane.f32.xlu1 %v681_v19  ;;  %v4177_v27 = vld [vmem:[%s3762_s27 + $0x1f0] sm:$0xff] }
  0x83   : > { %830 = vmatmul.mubr.f32.gmra.mxu0 %v3824_v28  ;;  %v4172_v28 = vld [vmem:[%s3762_s27 + $0x1e0] sm:$0xff] }
  0x84   : > { %834 = vmatprep.mubr.f32.mxu0 %v3811_v22  ;;  %v535_v22 = vld [vmem:[%s3762_s27 + $0x1f8] sm:$0xff]  ;;  %v690_v44 = vadd.f32 %v4169_v26, %v4172_v28 }
  0x85   : > { %v4174_v0 = vsel %vm471_vm15, 1.0, %v535_v22 }
  0x86   : > { %685 = vadd.xlane.f32.xlu0 %v684_v46  ;;  %688 = vadd.xlane.f32.xlu1 %v687_v5  ;;  %v693_v19 = vadd.f32 %v4174_v0, %v4177_v27 }
  0x87   : > { %835 = vmatmul.mubr.f32.gmra.mxu0 %v3813_v23 }
  0x88   : > { %839 = vmatprep.mubr.f32.mxu0 %v3829_v30  ;;  %v1049_v30 = vld [vmem:[%s5065_s2] sm:$0xff] }
  0x89   : > { %3141 = vmatprep.subr.mxu1 %v1049_v30 }
  0x8a   : > { %691 = vadd.xlane.f32.xlu0 %v690_v44  ;;  %694 = vadd.xlane.f32.xlu1 %v693_v19 }
  0x8b   : > { %840 = vmatmul.mubr.f32.gmra.mxu0 %v3831_v31  ;;  %3142 = vmatpush3.msra.mxu1 %v1049_v30 }
  0x8c   : > { %844 = vmatprep.mubr.f32.mxu0 %v3848_v40  ;;  %v5163_v40 = vmov 0.0  }
  0x8d   : > { %1411 = vmatprep.subr.mxu1 %v5163_v40 }
  0x8f   : > { %845 = vmatmul.mubr.f32.gmra.mxu0 %v3852_v41 }
  0x90   : > { %849 = vmatprep.mubr.f32.mxu0 %v3855_v42  ;;  %v5164_v42 = vld [vmem:[#allocation12_spill] sm:$0xff] }
  0x93   : > { %850 = vmatmul.mubr.f32.gmra.mxu0 %v3857_v43 }
  0x94   : > { %854 = vmatprep.mubr.f32.mxu0 %v3874_v52  ;;  %v5165_v52 = vld [vmem:[#allocation13_spill] sm:$0xff] }
  0x97   : > { %855 = vmatmul.mubr.f32.gmra.mxu0 %v3878_v53 }
  0x98   : > { %859 = vmatprep.mubr.f32.mxu0 %v3881_v54 }
  0x9b   : > { %860 = vmatmul.mubr.f32.gmra.mxu0 %v3883_v55 }
  0x9c   : > { %864 = vmatprep.mubr.f32.mxu0 %v3900_v1 }
  0x9f   : > { %865 = vmatmul.mubr.f32.gmra.mxu0 %v3904_v2 }
  0xa0   : > { %869 = vmatprep.mubr.f32.mxu0 %v3907_v3 }
  0xa3   : > { %870 = vmatmul.mubr.f32.gmra.mxu0 %v3909_v4 }
  0xa4   : > { %874 = vmatprep.mubr.f32.mxu0 %v3926_v15 }
  0xa7   : > { %875 = vmatmul.mubr.f32.gmra.mxu0 %v3930_v16 }
  0xa8   : > { %879 = vmatprep.mubr.f32.mxu0 %v3934_v18 }
  0xab   : > { %880 = vmatmul.mubr.f32.gmra.mxu0 %v3936_v20 }
  0xac   : > { %884 = vmatprep.mubr.f32.mxu0 %v3952_v34 }
  0xaf   : > { %885 = vmatmul.mubr.f32.gmra.mxu0 %v3954_v35 }
  0xb0   : > { %889 = vmatprep.mubr.f32.mxu0 %v3958_v36 }
  0xb3   : > { %890 = vmatmul.mubr.f32.gmra.mxu0 %v3960_v37 }
  0xb4   : > { %894 = vmatprep.mubr.f32.mxu0 %v3979_v51 }
  0xb7   : > { %895 = vmatmul.mubr.f32.gmra.mxu0 %v3983_v56 }
  0xb8   : > { %899 = vmatprep.mubr.f32.mxu0 %v3986_v57 }
  0xbb   : > { %900 = vmatmul.mubr.f32.gmra.mxu0 %v3988_v58 }
  0xbc   : > { %904 = vmatprep.mubr.f32.mxu0 %v4004_v9 }
  0xbf   : > { %905 = vmatmul.mubr.f32.gmra.mxu0 %v4007_v10 }
  0xc0   : > { %909 = vmatprep.mubr.f32.mxu0 %v4009_v11 }
  0xc3   : > { %910 = vmatmul.mubr.f32.gmra.mxu0 %v4012_v12 }
  0xc4   : > { %914 = vmatprep.mubr.f32.mxu0 %v4027_v29 }
  0xc7   : > { %915 = vmatmul.mubr.f32.gmra.mxu0 %v4030_v32 }
  0xc8   : > { %919 = vmatprep.mubr.f32.mxu0 %v4032_v33 }
  0xca   : > { %v602_v54 = vpop.xlane.xlu0 %601 }
  0xcb   : > { %920 = vmatmul.mubr.f32.gmra.mxu0 %v4035_v38  ;;  %v696_v1 = vmax.f32 %v602_v54, 1.0 }
  0xcc   : > { %924 = vmatprep.mubr.f32.mxu0 %v4050_v59  ;;  %v608_v15 = vpop.xlane.xlu1 %607 }
  0xcd   : > { %3414 = vrcp.f32 %v696_v1  ;;  %v698_v34 = vmax.f32 %v608_v15, 1.0 }
  0xce   : > { %v605_v3 = vpop.xlane.xlu0 %604 }
  0xcf   : > { %925 = vmatmul.mubr.f32.gmra.mxu0 %v4053_v60  ;;  %v697_v18 = vmax.f32 %v605_v3, 1.0 }
  0xd0   : > { %929 = vmatprep.mubr.f32.mxu0 %v4064_v13  ;;  %v611_v36 = vpop.xlane.xlu1 %610 }
  0xd1   : > { %3416 = vrcp.f32 %v697_v18  ;;  %v699_v51 = vmax.f32 %v611_v36, 1.0 }
  0xd2   : > { %3418 = vrcp.f32 %v698_v34  ;;  %v614_v57 = vpop.xlane.xlu0 %613 }
  0xd3   : > { %930 = vmatmul.mubr.f32.gmra.mxu0 %v4067_v14  ;;  %3420 = vrcp.f32 %v699_v51  ;;  %v700_v10 = vmax.f32 %v614_v57, 1.0 }
  0xd4   : > { %934 = vmatprep.mubr.f32.mxu0 %v4083_v47 }
  0xd5   : > { %3422 = vrcp.f32 %v700_v10 }
  0xd7   : > { %935 = vmatmul.mubr.f32.gmra.mxu0 %v4086_v48 }
  0xd8   : > { %939 = vmatprep.mubr.f32.mxu0 %v4088_v49 }
  0xda   : > { %v4244_v12 = vpop.eup %3414 }
  0xdb   : > { %940 = vmatmul.mubr.f32.gmra.mxu0 %v5164_v42 }
  0xdc   : > { %944 = vmatprep.mubr.f32.mxu0 %v4104_v21 }
  0xde   : > { %v4247_v14 = vpop.eup %3416 }
  0xdf   : > { %945 = vmatmul.mubr.f32.gmra.mxu0 %v4107_v24  ;;  %v620_v24 = vpop.xlane.xlu0 %619 }
  0xe0   : > { %949 = vmatprep.mubr.f32.mxu0 %v4110_v17  ;;  %v702_v39 = vmax.f32 %v620_v24, 1.0 }
  0xe3   : > { %950 = vmatmul.mubr.f32.gmra.mxu0 %v4113_v25  ;;  %v626_v19 = vpop.xlane.xlu0 %625 }
  0xe4   : > { %954 = vmatprep.mubr.f32.mxu0 %v4127_v61 }
  0xe7   : > { %955 = vmatmul.mubr.f32.gmra.mxu0 %v5165_v52  ;;  %v704_v52 = vmax.f32 %v626_v19, 1.0  ;;  %v632_v57 = vpop.xlane.xlu0 %631 }
  0xe8   : > { %959 = vmatprep.mubr.f32.mxu0 %v4132_v62 }
  0xeb   : > { %960 = vmatmul.mubr.f32.gmra.mxu0 %v4135_v7 }
  0xec   : > { %964 = vmatprep.mubr.f32.mxu0 %v4149_v50 }
  0xef   : > { %965 = vmatmul.mubr.f32.gmra.mxu0 %v4152_v8  ;;  %v4251_v8 = vpop.eup %3418 }
  0xf0   : > { %969 = vmatprep.mubr.f32.mxu0 %v4154_v63 }
  0xf3   : > { %970 = vmatmul.mubr.f32.gmra.mxu0 %v4157_v45 }
  0xf4   : > { %974 = vmatprep.mubr.f32.mxu0 %v4169_v26 }
  0xf7   : > { %975 = vmatmul.mubr.f32.gmra.mxu0 %v4172_v28  ;;  %v617_v28 = vpop.xlane.xlu1 %616 }
  0xf8   : > { %979 = vmatprep.mubr.f32.mxu0 %v4174_v0  ;;  %v701_v60 = vmax.f32 %v617_v28, 1.0 }
  0xfa   : > { %3424 = vrcp.f32 %v701_v60 }
  0xfb   : > { %980 = vmatmul.mubr.f32.gmra.mxu0 %v4177_v27  ;;  %v623_v6 = vpop.xlane.xlu1 %622  ;;  %3426 = vrcp.f32 %v702_v39  ;;  %v4255_v27 = vpop.eup %3420 }
  0xfc   : > { %v703_v5 = vmax.f32 %v623_v6, 1.0  ;;  %v4259_v54 = vpop.eup %3422  ;;  %v638_v6 = vpop.xlane.xlu0 %637 }
  0xfe   : > { %3428 = vrcp.f32 %v703_v5  ;;  %v708_v5 = vmax.f32 %v638_v6, 1.0 }
  0xff   : > { %v629_v3 = vpop.xlane.xlu1 %628  ;;  %3430 = vrcp.f32 %v704_v52 }
 0x100   : > { %v705_v34 = vmax.f32 %v629_v3, 1.0 }
 0x102   : > { %3432 = vrcp.f32 %v705_v34 }
 0x107   : > { %v4263_v36 = vpop.eup %3424 }
 0x13f   : > { %v826_v32 = vpop.f32.mrf.mxu0 }
 0x140   : > { %v986_v38 = vmul.f32 %v4244_v12, %v826_v32  ;;  %v706_v32 = vmax.f32 %v632_v57, 1.0 }
 0x141   : > { %v828_v48 = vpop.f32.mrf.mxu0 }
 0x142   : > { %3143 = vmatprep.mubr.msk.f32.mxu1 %vm1057_vm0, %v986_v38  ;;  %v4267_v38 = vpop.eup %3426  ;;  %v635_v48 = vpop.xlane.xlu1 %634  ;;  %3434 = vrcp.f32 %v706_v32 }
 0x143   : > { %v831_v25 = vpop.f32.mrf.mxu0  ;;  %v4271_v39 = vpop.eup %3428 }
 0x144   : > { %v988_v7 = vmul.f32 %v4247_v14, %v831_v25 }
 0x145   : > { %v833_v45 = vpop.f32.mrf.mxu0 }
 0x146   : > { %3144 = vmatmul.mubr.msk.f32.vlgmr.msra.gmra.mxu1 %vm1057_vm0, %v988_v7  ;;  %v707_v7 = vmax.f32 %v635_v48, 1.0 }
 0x147   : > { %v836_v46 = vpop.f32.mrf.mxu0 }
 0x148   : > { %v990_v22 = vmul.f32 %v4251_v8, %v836_v46  ;;  %3436 = vrcp.f32 %v707_v7 }
 0x149   : > { %v838_v44 = vpop.f32.mrf.mxu0  ;;  %3438 = vrcp.f32 %v708_v5 }
 0x14a   : > { %3146 = vmatprep.mubr.msk.f32.mxu1 %vm1057_vm0, %v990_v22  ;;  %v4275_v44 = vpop.eup %3430 }
 0x14b   : > { %v841_v30 = vpop.f32.mrf.mxu0  ;;  %v4279_v3 = vpop.eup %3432 }
 0x14c   : > { %v992_v42 = vmul.f32 %v4255_v27, %v841_v30  ;;  %v641_v30 = vpop.xlane.xlu1 %640 }
 0x14d   : > { %v843_v1 = vpop.f32.mrf.mxu0 }
 0x14e   : > { %3147 = vmatmul.mubr.msk.f32.gmra.mxu1 %vm1057_vm0, %v992_v42  ;;  %v709_v1 = vmax.f32 %v641_v30, 1.0 }
 0x14f   : > { %v846_v15 = vpop.f32.mrf.mxu0 }
 0x150   : > { %v994_v18 = vmul.f32 %v4259_v54, %v846_v15  ;;  %3440 = vrcp.f32 %v709_v1  ;;  %v647_v32 = vpop.xlane.xlu1 %646 }
 0x151   : > { %v848_v51 = vpop.f32.mrf.mxu0 }
 0x152   : > { %3149 = vmatprep.mubr.msk.f32.mxu1 %vm1057_vm0, %v994_v18  ;;  %v644_v18 = vpop.xlane.xlu0 %643 }
 0x153   : > { %v851_v10 = vpop.f32.mrf.mxu0  ;;  %v710_v57 = vmax.f32 %v644_v18, 1.0 }
 0x154   : > { %v996_v28 = vmul.f32 %v4263_v36, %v851_v10  ;;  %v4283_v10 = vpop.eup %3434  ;;  %v653_v30 = vpop.xlane.xlu1 %652 }
 0x155   : > { %v853_v60 = vpop.f32.mrf.mxu0  ;;  %5166 = vst [vmem:[#allocation12_spill] sm:$0xff] %v4283_v10  ;;  %3442 = vrcp.f32 %v710_v57  ;;  %v713_v1 = vmax.f32 %v653_v30, 1.0 }
 0x156   : > { %3150 = vmatmul.mubr.msk.f32.gmra.mxu1 %vm1057_vm0, %v996_v28 }
 0x157   : > { %v856_v24 = vpop.f32.mrf.mxu0 }
 0x158   : > { %v998_v25 = vmul.f32 %v4267_v38, %v856_v24  ;;  %v711_v24 = vmax.f32 %v647_v32, 1.0 }
 0x159   : > { %v858_v45 = vpop.f32.mrf.mxu0 }
 0x15a   : > { %3152 = vmatprep.mubr.msk.f32.mxu1 %vm1057_vm0, %v998_v25  ;;  %v4287_v25 = vpop.eup %3436  ;;  %v650_v45 = vpop.xlane.xlu0 %649  ;;  %3444 = vrcp.f32 %v711_v24 }
 0x15b   : > { %v861_v46 = vpop.f32.mrf.mxu0  ;;  %5167 = vst [vmem:[#allocation13_spill] sm:$0xff] %v4287_v25  ;;  %v4291_v5 = vpop.eup %3438 }
 0x15c   : > { %v1000_v22 = vmul.f32 %v4271_v39, %v861_v46  ;;  %5168 = vst [vmem:[#allocation14_spill] sm:$0xff] %v4291_v5 }
 0x15d   : > { %v863_v19 = vpop.f32.mrf.mxu0 }
 0x15e   : > { %3153 = vmatmul.mubr.msk.f32.gmra.mxu1 %vm1057_vm0, %v1000_v22  ;;  %v712_v22 = vmax.f32 %v650_v45, 1.0 }
 0x15f   : > { %v866_v42 = vpop.f32.mrf.mxu0 }
 0x160   : > { %v1002_v52 = vmul.f32 %v4275_v44, %v866_v42  ;;  %3446 = vrcp.f32 %v712_v22 }
 0x161   : > { %v868_v15 = vpop.f32.mrf.mxu0  ;;  %3448 = vrcp.f32 %v713_v1 }
 0x162   : > { %3155 = vmatprep.mubr.msk.f32.mxu1 %vm1057_vm0, %v1002_v52  ;;  %v4295_v15 = vpop.eup %3440 }
 0x163   : > { %v871_v34 = vpop.f32.mrf.mxu0  ;;  %5169 = vst [vmem:[#allocation15_spill] sm:$0xff] %v4295_v15  ;;  %v4299_v32 = vpop.eup %3442 }
 0x164   : > { %v1004_v51 = vmul.f32 %v4279_v3, %v871_v34  ;;  %v656_v34 = vpop.xlane.xlu0 %655  ;;  %5170 = vst [vmem:[#allocation16_spill] sm:$0xff] %v4299_v32 }
 0x165   : > { %v873_v28 = vpop.f32.mrf.mxu0 }
 0x166   : > { %3156 = vmatmul.mubr.msk.f32.gmra.mxu1 %vm1057_vm0, %v1004_v51  ;;  %v714_v28 = vmax.f32 %v656_v34, 1.0 }
 0x167   : > { %v876_v60 = vpop.f32.mrf.mxu0 }
 0x168   : > { %v1006_v48 = vmul.f32 %v4283_v10, %v876_v60  ;;  %3450 = vrcp.f32 %v714_v28  ;;  %v662_v22 = vpop.xlane.xlu0 %661 }
 0x169   : > { %v878_v7 = vpop.f32.mrf.mxu0 }
 0x16a   : > { %3158 = vmatprep.mubr.msk.f32.mxu1 %vm1057_vm0, %v1006_v48  ;;  %v659_v48 = vpop.xlane.xlu1 %658 }
 0x16b   : > { %v881_v6 = vpop.f32.mrf.mxu0  ;;  %v715_v45 = vmax.f32 %v659_v48, 1.0 }
 0x16c   : > { %v1008_v46 = vmul.f32 %v4287_v25, %v881_v6  ;;  %v4303_v6 = vpop.eup %3444  ;;  %v668_v48 = vpop.xlane.xlu0 %667 }
 0x16d   : > { %v883_v19 = vpop.f32.mrf.mxu0  ;;  %5171 = vst [vmem:[#allocation17_spill] sm:$0xff] %v4303_v6  ;;  %3452 = vrcp.f32 %v715_v45  ;;  %v718_v45 = vmax.f32 %v668_v48, 1.0 }
 0x16e   : > { %3159 = vmatmul.mubr.msk.f32.gmra.mxu1 %vm1057_vm0, %v1008_v46 }
 0x16f   : > { %v886_v42 = vpop.f32.mrf.mxu0 }
 0x170   : > { %v1010_v52 = vmul.f32 %v4291_v5, %v886_v42  ;;  %v716_v42 = vmax.f32 %v662_v22, 1.0 }
 0x171   : > { %v888_v18 = vpop.f32.mrf.mxu0 }
 0x172   : > { %3161 = vmatprep.mubr.msk.f32.mxu1 %vm1057_vm0, %v1010_v52  ;;  %v4307_v52 = vpop.eup %3446  ;;  %v665_v18 = vpop.xlane.xlu1 %664  ;;  %3454 = vrcp.f32 %v716_v42 }
 0x173   : > { %v891_v51 = vpop.f32.mrf.mxu0  ;;  %5172 = vst [vmem:[#allocation18_spill] sm:$0xff] %v4307_v52  ;;  %v4311_v28 = vpop.eup %3448 }
 0x174   : > { %v1012_v57 = vmul.f32 %v4295_v15, %v891_v51  ;;  %5173 = vst [vmem:[#allocation19_spill] sm:$0xff] %v4311_v28 }
 0x175   : > { %v893_v60 = vpop.f32.mrf.mxu0 }
 0x176   : > { %3162 = vmatmul.mubr.msk.f32.gmra.mxu1 %vm1057_vm0, %v1012_v57  ;;  %v717_v57 = vmax.f32 %v665_v18, 1.0 }
 0x177   : > { %v896_v24 = vpop.f32.mrf.mxu0 }
 0x178   : > { %v1014_v7 = vmul.f32 %v4299_v32, %v896_v24  ;;  %3456 = vrcp.f32 %v717_v57 }
 0x179   : > { %v898_v46 = vpop.f32.mrf.mxu0  ;;  %3458 = vrcp.f32 %v718_v45 }
 0x17a   : > { %3164 = vmatprep.mubr.msk.f32.mxu1 %vm1057_vm0, %v1014_v7  ;;  %v4315_v46 = vpop.eup %3450 }
 0x17b   : > { %v901_v19 = vpop.f32.mrf.mxu0  ;;  %5174 = vst [vmem:[#allocation20_spill] sm:$0xff] %v4315_v46  ;;  %v4319_v18 = vpop.eup %3452 }
 0x17c   : > { %v1016_v30 = vmul.f32 %v4303_v6, %v901_v19  ;;  %v671_v19 = vpop.xlane.xlu1 %670  ;;  %5175 = vst [vmem:[#allocation21_spill] sm:$0xff] %v4319_v18 }
 0x17d   : > { %v903_v1 = vpop.f32.mrf.mxu0 }
 0x17e   : > { %3165 = vmatmul.mubr.msk.f32.gmra.mxu1 %vm1057_vm0, %v1016_v30  ;;  %v719_v1 = vmax.f32 %v671_v19, 1.0 }
 0x17f   : > { %v906_v34 = vpop.f32.mrf.mxu0 }
 0x180   : > { %v1018_v51 = vmul.f32 %v4307_v52, %v906_v34  ;;  %3460 = vrcp.f32 %v719_v1 }
 0x181   : > { %v908_v60 = vpop.f32.mrf.mxu0 }
 0x182   : > { %3167 = vmatprep.mubr.msk.f32.mxu1 %vm1057_vm0, %v1018_v51  ;;  %v674_v51 = vpop.xlane.xlu0 %673 }
 0x183   : > { %v911_v24 = vpop.f32.mrf.mxu0  ;;  %v720_v48 = vmax.f32 %v674_v51, 1.0 }
 0x184   : > { %v1020_v7 = vmul.f32 %v4311_v28, %v911_v24  ;;  %v4323_v24 = vpop.eup %3454 }
 0x185   : > { %v913_v22 = vpop.f32.mrf.mxu0  ;;  %5176 = vst [vmem:[#allocation22_spill] sm:$0xff] %v4323_v24  ;;  %3462 = vrcp.f32 %v720_v48 }
 0x186   : > { %3168 = vmatmul.mubr.msk.f32.gmra.mxu1 %vm1057_vm0, %v1020_v7  ;;  %v677_v7 = vpop.xlane.xlu1 %676 }
 0x187   : > { %v916_v30 = vpop.f32.mrf.mxu0  ;;  %v721_v19 = vmax.f32 %v677_v7, 1.0 }
 0x188   : > { %v1022_v42 = vmul.f32 %v4315_v46, %v916_v30 }
 0x189   : > { %v918_v34 = vpop.f32.mrf.mxu0  ;;  %3464 = vrcp.f32 %v721_v19 }
 0x18a   : > { %3170 = vmatprep.mubr.msk.f32.mxu1 %vm1057_vm0, %v1022_v42  ;;  %v4327_v34 = vpop.eup %3456  ;;  %v680_v42 = vpop.xlane.xlu0 %679 }
 0x18b   : > { %v921_v57 = vpop.f32.mrf.mxu0  ;;  %5177 = vst [vmem:[#allocation23_spill] sm:$0xff] %v4327_v34 }
 0x18c   : > { %v1024_v60 = vmul.f32 %v4319_v18, %v921_v57  ;;  %v722_v57 = vmax.f32 %v680_v42, 1.0 }
 0x18d   : > { %v923_v22 = vpop.f32.mrf.mxu0 }
 0x18e   : > { %3171 = vmatmul.mubr.msk.f32.gmra.mxu1 %vm1057_vm0, %v1024_v60  ;;  %v4331_v22 = vpop.eup %3458  ;;  %v683_v60 = vpop.xlane.xlu1 %682  ;;  %3466 = vrcp.f32 %v722_v57 }
 0x18f   : > { %v926_v30 = vpop.f32.mrf.mxu0  ;;  %5178 = vst [vmem:[#allocation24_spill] sm:$0xff] %v4331_v22  ;;  %v723_v7 = vmax.f32 %v683_v60, 1.0 }
 0x190   : > { %v1026_v45 = vmul.f32 %v4323_v24, %v926_v30 }
 0x191   : > { %v928_v46 = vpop.f32.mrf.mxu0  ;;  %3468 = vrcp.f32 %v723_v7 }
 0x192   : > { %3173 = vmatprep.mubr.msk.f32.mxu1 %vm1057_vm0, %v1026_v45  ;;  %v4335_v46 = vpop.eup %3460  ;;  %v686_v45 = vpop.xlane.xlu0 %685 }
 0x193   : > { %v931_v1 = vpop.f32.mrf.mxu0  ;;  %5179 = vst [vmem:[#allocation25_spill] sm:$0xff] %v4335_v46 }
 0x194   : > { %v1028_v51 = vmul.f32 %v4327_v34, %v931_v1  ;;  %v724_v1 = vmax.f32 %v686_v45, 1.0 }
 0x195   : > { %v933_v18 = vpop.f32.mrf.mxu0 }
 0x196   : > { %3174 = vmatmul.mubr.msk.f32.gmra.mxu1 %vm1057_vm0, %v1028_v51  ;;  %v4339_v18 = vpop.eup %3462  ;;  %v689_v51 = vpop.xlane.xlu1 %688  ;;  %3470 = vrcp.f32 %v724_v1 }
 0x197   : > { %v936_v30 = vpop.f32.mrf.mxu0  ;;  %5180 = vst [vmem:[#allocation26_spill] sm:$0xff] %v4339_v18  ;;  %v725_v60 = vmax.f32 %v689_v51, 1.0 }
 0x198   : > { %v1030_v48 = vmul.f32 %v4331_v22, %v936_v30 }
 0x199   : > { %v938_v24 = vpop.f32.mrf.mxu0  ;;  %3472 = vrcp.f32 %v725_v60 }
 0x19a   : > { %3176 = vmatprep.mubr.msk.f32.mxu1 %vm1057_vm0, %v1030_v48  ;;  %v4343_v24 = vpop.eup %3464  ;;  %v692_v48 = vpop.xlane.xlu0 %691 }
 0x19b   : > { %v941_v19 = vpop.f32.mrf.mxu0  ;;  %5181 = vst [vmem:[#allocation27_spill] sm:$0xff] %v4343_v24 }
 0x19c   : > { %v1032_v42 = vmul.f32 %v4335_v46, %v941_v19  ;;  %v726_v19 = vmax.f32 %v692_v48, 1.0 }
 0x19d   : > { %v943_v34 = vpop.f32.mrf.mxu0 }
 0x19e   : > { %3177 = vmatmul.mubr.msk.f32.gmra.mxu1 %vm1057_vm0, %v1032_v42  ;;  %v4347_v34 = vpop.eup %3466  ;;  %v695_v42 = vpop.xlane.xlu1 %694  ;;  %3474 = vrcp.f32 %v726_v19 }
 0x19f   : > { %v946_v30 = vpop.f32.mrf.mxu0  ;;  %5182 = vst [vmem:[#allocation28_spill] sm:$0xff] %v4347_v34  ;;  %v727_v51 = vmax.f32 %v695_v42, 1.0 }
 0x1a0   : > { %v1034_v57 = vmul.f32 %v4339_v18, %v946_v30 }
 0x1a1   : > { %v948_v22 = vpop.f32.mrf.mxu0  ;;  %3476 = vrcp.f32 %v727_v51 }
 0x1a2   : > { %3179 = vmatprep.mubr.msk.f32.mxu1 %vm1057_vm0, %v1034_v57  ;;  %v4351_v22 = vpop.eup %3468 }
 0x1a3   : > { %v951_v7 = vpop.f32.mrf.mxu0  ;;  %5183 = vst [vmem:[#allocation29_spill] sm:$0xff] %v4351_v22  ;;  %v4355_v48 = vpop.eup %3470 }
 0x1a4   : > { %v1036_v45 = vmul.f32 %v4343_v24, %v951_v7  ;;  %5184 = vst [vmem:[#allocation30_spill] sm:$0xff] %v4355_v48 }
 0x1a5   : > { %v953_v46 = vpop.f32.mrf.mxu0 }
 0x1a6   : > { %3180 = vmatmul.mubr.msk.f32.gmra.mxu1 %vm1057_vm0, %v1036_v45 }
 0x1a7   : > { %v956_v30 = vpop.f32.mrf.mxu0 }
 0x1a8   : > { %v1038_v1 = vmul.f32 %v4347_v34, %v956_v30  ;;  %v4359_v30 = vpop.eup %3472 }
 0x1a9   : > { %v958_v18 = vpop.f32.mrf.mxu0  ;;  %5185 = vst [vmem:[#allocation31_spill] sm:$0xff] %v4359_v30 }
 0x1aa   : > { %3182 = vmatprep.mubr.msk.f32.mxu1 %vm1057_vm0, %v1038_v1 }
 0x1ab   : > { %v961_v57 = vpop.f32.mrf.mxu0  ;;  %v4363_v1 = vpop.eup %3474 }
 0x1ac   : > { %v1040_v60 = vmul.f32 %v4351_v22, %v961_v57  ;;  %5186 = vst [vmem:[#allocation32_spill] sm:$0xff] %v4363_v1 }
 0x1ad   : > { %v963_v46 = vpop.f32.mrf.mxu0 }
 0x1ae   : > { %3183 = vmatmul.mubr.msk.f32.gmra.mxu1 %vm1057_vm0, %v1040_v60  ;;  %v4367_v46 = vpop.eup %3476 }
 0x1af   : > { %v966_v7 = vpop.f32.mrf.mxu0  ;;  %5187 = vst [vmem:[#allocation33_spill] sm:$0xff] %v4367_v46 }
 0x1b0   : > { %v1042_v45 = vmul.f32 %v4355_v48, %v966_v7 }
 0x1b1   : > { %v968_v19 = vpop.f32.mrf.mxu0 }
 0x1b2   : > { %3185 = vmatprep.mubr.msk.f32.mxu1 %vm1057_vm0, %v1042_v45 }
 0x1b3   : > { %v971_v18 = vpop.f32.mrf.mxu0 }
 0x1b4   : > { %v1044_v42 = vmul.f32 %v4359_v30, %v971_v18  ;;  %v3478_v18 = vld [vmem:[%s3762_s27 + $0x8] sm:$0xff] }
 0x1b5   : > { %v973_v51 = vpop.f32.mrf.mxu0 }
 0x1b6   : > { %3186 = vmatmul.mubr.msk.f32.gmra.mxu1 %vm1057_vm0, %v1044_v42 }
 0x1b7   : > { %v976_v57 = vpop.f32.mrf.mxu0 }
 0x1b8   : > { %v1046_v60 = vmul.f32 %v4363_v1, %v976_v57 }
 0x1b9   : > { %v978_v7 = vpop.f32.mrf.mxu0 }
 0x1ba   : > { %3188 = vmatprep.mubr.msk.f32.mxu1 %vm1057_vm0, %v1046_v60 }
 0x1bb   : > { %v981_v19 = vpop.f32.mrf.mxu0 }
 0x1bc   : > { %v1048_v48 = vmul.f32 %v4367_v46, %v981_v19 }
 0x1bd   : > { %v983_v45 = vpop.f32.mrf.mxu0 }
 0x1be   : > { %3189 = vmatmul.mubr.msk.f32.gmra.mxu1 %vm1057_vm0, %v1048_v48  ;;  %v4380_v48 = vld [vmem:[%s5066_s3] ss:$0 sm:$0xff] }
 0x1bf   : > { %1475 = vmatprep.mubr.f32.mxu1 %v3478_v18 }
 0x206   : > { %v4373_v30 = vpop.f32.mrf.mxu1 }
 0x208   : > { %v4375_v51 = vpop.f32.mrf.mxu1 }
 0x20e   : > { %v3148_v42 = vpop.f32.mrf.mxu1 }
 0x210   : > { %v1230_v22 = vpop.f32.mrf.mxu1 }
 0x216   : > { %v3151_v57 = vpop.f32.mrf.mxu1 }
 0x218   : > { %v1240_v1 = vpop.f32.mrf.mxu1 }
 0x21e   : > { %v3154_v34 = vpop.f32.mrf.mxu1 }
 0x220   : > { %v1250_v7 = vpop.f32.mrf.mxu1 }
 0x226   : > { %v3157_v24 = vpop.f32.mrf.mxu1 }
 0x228   : > { %v1260_v60 = vpop.f32.mrf.mxu1 }
 0x22e   : > { %v3160_v28 = vpop.f32.mrf.mxu1 }
 0x230   : > { %v1270_v52 = vpop.f32.mrf.mxu1 }
 0x236   : > { %v3163_v19 = vpop.f32.mrf.mxu1 }
 0x237   : > { %v4386_v32 = vadd.f32 %v3163_v19, %v4380_v48 }
 0x238   : > { %v1280_v45 = vpop.f32.mrf.mxu1 }
 0x239   : > { %5189 = vst [vmem:[#allocation35_spill] sm:$0xff] %v4386_v32  ;;  %v4393_v25 = vadd.f32 %v4380_v48, %v1280_v45  ;;  %v5106_v19 = vmax.f32 %v4386_v32, 0.0 }
 0x23b   : > { %5191 = vst [vmem:[#allocation37_spill] sm:$0xff] %v4393_v25  ;;  %v5107_v45 = vmax.f32 %v4393_v25, 0.0 }
 0x23e   : > { %v3166_v18 = vpop.f32.mrf.mxu1 }
 0x23f   : > { %v4383_v46 = vadd.f32 %v3166_v18, %v4380_v48  ;;  %v4400_v18 = vadd.f32 %v3160_v28, %v4380_v48  ;;  %v4414_v28 = vadd.f32 %v3157_v24, %v4380_v48  ;;  %v4428_v24 = vadd.f32 %v3154_v34, %v4380_v48 }
 0x240   : > { %v1290_v6 = vpop.f32.mrf.mxu1  ;;  %v4442_v34 = vadd.f32 %v3151_v57, %v4380_v48  ;;  %v4458_v57 = vadd.f32 %v3148_v42, %v4380_v48  ;;  %v4475_v42 = vadd.f32 %v4373_v30, %v4380_v48 }
 0x241   : > { %5188 = vst [vmem:[#allocation34_spill] sm:$0xff] %v4383_v46  ;;  %v5104_v15 = vmax.f32 %v4383_v46, 0.0  ;;  %v4390_v5 = vadd.f32 %v4380_v48, %v1290_v6  ;;  %5192 = vst [vmem:[#allocation38_spill] sm:$0xff] %v4400_v18  ;;  %v4407_v6 = vadd.f32 %v4380_v48, %v1270_v52  ;;  %v4421_v52 = vadd.f32 %v4380_v48, %v1260_v60 }
 0x242   : > { %5194 = vst [vmem:[#allocation40_spill] sm:$0xff] %v4414_v28  ;;  %5196 = vst [vmem:[#allocation42_spill] sm:$0xff] %v4428_v24  ;;  %v4435_v60 = vadd.f32 %v4380_v48, %v1250_v7  ;;  %v4449_v7 = vadd.f32 %v4380_v48, %v1240_v1  ;;  %v5115_v46 = vmax.f32 %v4442_v34, 0.0  ;;  %v4465_v1 = vadd.f32 %v4380_v48, %v1230_v22 }
 0x243   : > { %5190 = vst [vmem:[#allocation36_spill] sm:$0xff] %v4390_v5  ;;  %v5105_v10 = vmax.f32 %v4390_v5, 0.0  ;;  %1412 = vmatpush1.msra.mxu1 %v5104_v15  ;;  %5193 = vst [vmem:[#allocation39_spill] sm:$0xff] %v4407_v6  ;;  %v5108_v15 = vmax.f32 %v4400_v18, 0.0  ;;  %v5129_v30 = vmax.f32 %v4475_v42, 0.0 }
 0x244   : > { %1413 = vmatprep.subr.mxu1 %v5163_v40  ;;  %5195 = vst [vmem:[#allocation41_spill] sm:$0xff] %v4421_v52  ;;  %5197 = vst [vmem:[#allocation43_spill] sm:$0xff] %v4435_v60  ;;  %v5121_v5 = vmax.f32 %v4465_v1, 0.0 }
 0x245   : > { %1414 = vmatpush1.msra.mxu1 %v5105_v10  ;;  %v5109_v10 = vmax.f32 %v4407_v6, 0.0  ;;  %5198 = vst [vmem:[#allocation44_spill] sm:$0xff] %v4442_v34  ;;  %5199 = vst [vmem:[#allocation45_spill] sm:$0xff] %v4449_v7 }
 0x246   : > { %1415 = vmatprep.subr.mxu1 %v5163_v40  ;;  %5200 = vst [vmem:[#allocation46_spill] sm:$0xff] %v4458_v57  ;;  %5201 = vst [vmem:[#allocation47_spill] sm:$0xff] %v4465_v1 }
 0x247   : > { %1416 = vmatpush1.msra.mxu1 %v5106_v19  ;;  %v5110_v19 = vmax.f32 %v4414_v28, 0.0  ;;  %5202 = vst [vmem:[#allocation48_spill] sm:$0xff] %v4475_v42 }
 0x248   : > { %1417 = vmatprep.subr.mxu1 %v5163_v40 }
 0x249   : > { %1418 = vmatpush1.msra.mxu1 %v5107_v45  ;;  %v5112_v45 = vmax.f32 %v4421_v52, 0.0 }
 0x24a   : > { %1419 = vmatprep.subr.mxu1 %v5163_v40 }
 0x24b   : > { %1420 = vmatpush1.msra.mxu1 %v5108_v15  ;;  %v5113_v15 = vmax.f32 %v4428_v24, 0.0 }
 0x24c   : > { %1421 = vmatprep.subr.mxu1 %v5163_v40 }
 0x24d   : > { %1422 = vmatpush1.msra.mxu1 %v5109_v10  ;;  %v5114_v10 = vmax.f32 %v4435_v60, 0.0 }
 0x24e   : > { %1423 = vmatprep.subr.mxu1 %v5163_v40 }
 0x24f   : > { %1424 = vmatpush1.msra.mxu1 %v5110_v19  ;;  %v4454_v19 = vpop.f32.mrf.mxu1 }
 0x250   : > { %1425 = vmatprep.subr.mxu1 %v5163_v40 }
 0x251   : > { %1426 = vmatpush1.msra.mxu1 %v5112_v45  ;;  %v5117_v45 = vmax.f32 %v4449_v7, 0.0 }
 0x252   : > { %1427 = vmatprep.subr.mxu1 %v5163_v40 }
 0x253   : > { %1428 = vmatpush1.msra.mxu1 %v5113_v15  ;;  %v4470_v15 = vpop.f32.mrf.mxu1 }
 0x254   : > { %1429 = vmatprep.subr.mxu1 %v5163_v40 }
 0x255   : > { %1430 = vmatpush1.msra.mxu1 %v5114_v10  ;;  %v5119_v10 = vmax.f32 %v4458_v57, 0.0  ;;  %v4480_v22 = vpop.f32.mrf.mxu1 }
 0x256   : > { %1431 = vmatprep.subr.mxu1 %v5163_v40 }
 0x257   : > { %1432 = vmatpush1.msra.mxu1 %v5115_v46  ;;  %v4485_v46 = vadd.f32 %v4380_v48, %v4375_v51 }
 0x258   : > { %1433 = vmatprep.subr.mxu1 %v5163_v40 }
 0x259   : > { %1434 = vmatpush1.msra.mxu1 %v5117_v45  ;;  %5203 = vst [vmem:[#allocation49_spill] sm:$0xff] %v4485_v46  ;;  %v4494_v45 = vpop.f32.mrf.mxu1  ;;  %v5132_v32 = vmax.f32 %v4485_v46, 0.0 }
 0x25a   : > { %1435 = vmatprep.subr.mxu1 %v5163_v40 }
 0x25b   : > { %1436 = vmatpush1.msra.mxu1 %v5119_v10  ;;  %v3175_v51 = vpop.f32.mrf.mxu1 }
 0x25c   : > { %1437 = vmatprep.subr.mxu1 %v5163_v40 }
 0x25d   : > { %1438 = vmatpush1.msra.mxu1 %v5121_v5  ;;  %v1320_v10 = vpop.f32.mrf.mxu1 }
 0x25e   : > { %1439 = vmatprep.subr.mxu1 %v5163_v40 }
 0x25f   : > { %1440 = vmatpush1.msra.mxu1 %v5129_v30  ;;  %v3178_v25 = vpop.f32.mrf.mxu1 }
 0x260   : > { %1441 = vmatprep.subr.mxu1 %v5163_v40 }
 0x261   : > { %1442 = vmatpush1.msra.mxu1 %v5132_v32  ;;  %v1330_v5 = vpop.f32.mrf.mxu1 }
 0x262   : > { %1443 = vmatprep.subr.mxu1 %v5163_v40 }
 0x266   : > { %v3181_v18 = vpop.f32.mrf.mxu1 }
 0x268   : > { %v1340_v6 = vpop.f32.mrf.mxu1 }
 0x26e   : > { %v3184_v28 = vpop.f32.mrf.mxu1 }
 0x270   : > { %v1350_v52 = vpop.f32.mrf.mxu1 }
 0x276   : > { %v3187_v24 = vpop.f32.mrf.mxu1 }
 0x277   : > { %v4508_v57 = vadd.f32 %v3187_v24, %v4380_v48 }
 0x278   : > { %v1360_v60 = vpop.f32.mrf.mxu1 }
 0x279   : > { %v4515_v42 = vadd.f32 %v4380_v48, %v1360_v60  ;;  %v5138_v24 = vmax.f32 %v4508_v57, 0.0  ;;  %v4529_v60 = vadd.f32 %v4380_v48, %v1350_v52  ;;  %v4543_v52 = vadd.f32 %v4380_v48, %v1340_v6 }
 0x27a   : > { %v4557_v6 = vadd.f32 %v4380_v48, %v1330_v5  ;;  %v4571_v5 = vadd.f32 %v4380_v48, %v1320_v10  ;;  %v4587_v10 = vadd.f32 %v4380_v48, %v4494_v45  ;;  %v4603_v45 = vadd.f32 %v4380_v48, %v4470_v15  ;;  %v1671_v15 = vld [vmem:[%s5067_s4 + $0x18] sm:$0xff] }
 0x27b   : > { %3191 = vmatprep.subr.mxu0 %v1671_v15 }
 0x27c   : > { %3192 = vmatpush3.msra.mxu0 %v1671_v15 }
 0x27e   : > { %v3190_v34 = vpop.f32.mrf.mxu1 }
 0x27f   : > { %v4505_v30 = vadd.f32 %v3190_v34, %v4380_v48  ;;  %v4522_v34 = vadd.f32 %v3184_v28, %v4380_v48  ;;  %v4536_v28 = vadd.f32 %v3181_v18, %v4380_v48  ;;  %v4550_v18 = vadd.f32 %v3178_v25, %v4380_v48 }
 0x280   : > { %v1370_v7 = vpop.f32.mrf.mxu1  ;;  %v4564_v25 = vadd.f32 %v3175_v51, %v4380_v48  ;;  %v4579_v51 = vadd.f32 %v4480_v22, %v4380_v48  ;;  %v4595_v22 = vadd.f32 %v4454_v19, %v4380_v48 }
 0x281   : > { %v5136_v32 = vmax.f32 %v4505_v30, 0.0  ;;  %v4512_v1 = vadd.f32 %v4380_v48, %v1370_v7  ;;  %v5139_v7 = vmax.f32 %v4515_v42, 0.0  ;;  %v1670_v48 = vld [vmem:[%s5067_s4 + $0x10] sm:$0xff] }
 0x282   : > { %v5150_v19 = vmax.f32 %v4595_v22, 0.0  ;;  %3193 = vmatprep.subr.mxu0 %v1670_v48 }
 0x283   : > { %v5137_v46 = vmax.f32 %v4512_v1, 0.0  ;;  %1444 = vmatpush2.msra.mxu1 %v5136_v32  ;;  %v5140_v32 = vmax.f32 %v4522_v34, 0.0  ;;  %3194 = vmatpush3.msra.mxu0 %v1670_v48 }
 0x284   : > { %1445 = vmatprep.subr.mxu1 %v5163_v40 }
 0x285   : > { %1446 = vmatpush2.msra.mxu1 %v5137_v46  ;;  %v5141_v46 = vmax.f32 %v4529_v60, 0.0 }
 0x286   : > { %1447 = vmatprep.subr.mxu1 %v5163_v40 }
 0x287   : > { %1448 = vmatpush2.msra.mxu1 %v5138_v24  ;;  %v5142_v24 = vmax.f32 %v4536_v28, 0.0 }
 0x288   : > { %1449 = vmatprep.subr.mxu1 %v5163_v40 }
 0x289   : > { %1450 = vmatpush2.msra.mxu1 %v5139_v7  ;;  %v5143_v7 = vmax.f32 %v4543_v52, 0.0 }
 0x28a   : > { %1451 = vmatprep.subr.mxu1 %v5163_v40 }
 0x28b   : > { %1452 = vmatpush2.msra.mxu1 %v5140_v32  ;;  %v5144_v32 = vmax.f32 %v4550_v18, 0.0 }
 0x28c   : > { %1453 = vmatprep.subr.mxu1 %v5163_v40 }
 0x28d   : > { %1454 = vmatpush2.msra.mxu1 %v5141_v46  ;;  %v5145_v46 = vmax.f32 %v4557_v6, 0.0 }
 0x28e   : > { %1455 = vmatprep.subr.mxu1 %v5163_v40 }
 0x28f   : > { %1456 = vmatpush2.msra.mxu1 %v5142_v24  ;;  %v5146_v24 = vmax.f32 %v4564_v25, 0.0 }
 0x290   : > { %1457 = vmatprep.subr.mxu1 %v5163_v40 }
 0x291   : > { %1458 = vmatpush2.msra.mxu1 %v5143_v7  ;;  %v5147_v7 = vmax.f32 %v4571_v5, 0.0 }
 0x292   : > { %1459 = vmatprep.subr.mxu1 %v5163_v40 }
 0x293   : > { %1460 = vmatpush2.msra.mxu1 %v5144_v32  ;;  %v5148_v32 = vmax.f32 %v4579_v51, 0.0 }
 0x294   : > { %1461 = vmatprep.subr.mxu1 %v5163_v40 }
 0x295   : > { %1462 = vmatpush2.msra.mxu1 %v5145_v46  ;;  %v5149_v46 = vmax.f32 %v4587_v10, 0.0 }
 0x296   : > { %1463 = vmatprep.subr.mxu1 %v5163_v40 }
 0x297   : > { %1464 = vmatpush2.msra.mxu1 %v5146_v24  ;;  %v1395_v24 = vmax.f32 %v4603_v45, 0.0 }
 0x298   : > { %1465 = vmatprep.subr.mxu1 %v5163_v40 }
 0x299   : > { %1466 = vmatpush2.msra.mxu1 %v5147_v7  ;;  %v5204_v7 = vld [vmem:[#allocation10_spill] sm:$0xff] }
 0x29a   : > { %1467 = vmatprep.subr.mxu1 %v5163_v40 }
 0x29b   : > { %1468 = vmatpush2.msra.mxu1 %v5148_v32  ;;  %v3479_v32 = vld [vmem:[%s3762_s27 + $0x18] sm:$0xff] }
 0x29c   : > { %1469 = vmatprep.subr.mxu1 %v5163_v40 }
 0x29d   : > { %1470 = vmatpush2.msra.mxu1 %v5149_v46  ;;  %v5205_v46 = vld [vmem:[#allocation11_spill] sm:$0xff] }
 0x29e   : > { %1471 = vmatprep.subr.mxu1 %v5163_v40 }
 0x29f   : > { %1472 = vmatpush2.msra.mxu1 %v5150_v19  ;;  %v3481_v19 = vld [vmem:[%s3762_s27 + $0x38] sm:$0xff] }
 0x2a0   : > { %1473 = vmatprep.subr.mxu1 %v5163_v40  ;;  %v3480_v40 = vld [vmem:[%s3762_s27 + $0x28] sm:$0xff] }
 0x2a1   : > { %1474 = vmatpush2.msra.mxu1 %v1395_v24 }
 0x2a2   : > { %1476 = vmatmul.mubr.f32.vlgmr.msra.gmra.mxu1 %v5204_v7  ;;  %3355 = vmatprep.subr.mxu1 %v1671_v15  ;;  %v3482_v7 = vld [vmem:[%s3762_s27 + $0x48] sm:$0xff] }
 0x2a3   : > { %1480 = vmatprep.mubr.f32.mxu1 %v3479_v32  ;;  %3359 = vmatpush3.msra.mxu1 %v1671_v15  ;;  %v3483_v32 = vld [vmem:[%s3762_s27 + $0x58] sm:$0xff]  ;;  %v3507_v15 = vld [vmem:[%s3762_s27 + $0x1d0] sm:$0xff] }
 0x2a4   : > { %3356 = vmatprep.subr.mxu1 %v1670_v48 }
 0x2a5   : > { %3360 = vmatpush3.msra.mxu1 %v1670_v48 }
 0x2a6   : > { %1481 = vmatmul.mubr.f32.gmra.mxu1 %v5205_v46  ;;  %v3484_v46 = vld [vmem:[%s3762_s27 + $0x68] sm:$0xff] }
 0x2a7   : > { %1485 = vmatprep.mubr.f32.mxu1 %v3480_v40 }
 0x2aa   : > { %1486 = vmatmul.mubr.f32.gmra.mxu1 %v3813_v23  ;;  %v3485_v23 = vld [vmem:[%s3762_s27 + $0x78] sm:$0xff] }
 0x2ab   : > { %1490 = vmatprep.mubr.f32.mxu1 %v3481_v19  ;;  %v3493_v19 = vld [vmem:[%s3762_s27 + $0xf8] sm:$0xff] }
 0x2ae   : > { %1491 = vmatmul.mubr.f32.gmra.mxu1 %v3831_v31  ;;  %v3486_v31 = vld [vmem:[%s3762_s27 + $0x88] sm:$0xff] }
 0x2af   : > { %1495 = vmatprep.mubr.f32.mxu1 %v3482_v7 }
 0x2b2   : > { %1496 = vmatmul.mubr.f32.gmra.mxu1 %v3852_v41  ;;  %v3487_v41 = vld [vmem:[%s3762_s27 + $0x98] sm:$0xff] }
 0x2b3   : > { %1500 = vmatprep.mubr.f32.mxu1 %v3483_v32 }
 0x2b6   : > { %1501 = vmatmul.mubr.f32.gmra.mxu1 %v3857_v43  ;;  %v3488_v43 = vld [vmem:[%s3762_s27 + $0xa8] sm:$0xff] }
 0x2b7   : > { %1505 = vmatprep.mubr.f32.mxu1 %v3484_v46  ;;  %v2034_v46 = vld [vmem:[%s5069_s6 + $0x8] sm:$0xff] }
 0x2ba   : > { %1506 = vmatmul.mubr.f32.gmra.mxu1 %v3878_v53  ;;  %v3489_v53 = vld [vmem:[%s3762_s27 + $0xb8] sm:$0xff] }
 0x2bb   : > { %1510 = vmatprep.mubr.f32.mxu1 %v3485_v23 }
 0x2be   : > { %1511 = vmatmul.mubr.f32.gmra.mxu1 %v3883_v55  ;;  %v3490_v55 = vld [vmem:[%s3762_s27 + $0xc8] sm:$0xff] }
 0x2bf   : > { %1515 = vmatprep.mubr.f32.mxu1 %v3486_v31 }
 0x2c2   : > { %1516 = vmatmul.mubr.f32.gmra.mxu1 %v3904_v2  ;;  %v3491_v2 = vld [vmem:[%s3762_s27 + $0xd8] sm:$0xff] }
 0x2c3   : > { %1520 = vmatprep.mubr.f32.mxu1 %v3487_v41 }
 0x2c6   : > { %1521 = vmatmul.mubr.f32.gmra.mxu1 %v3909_v4  ;;  %v3492_v4 = vld [vmem:[%s3762_s27 + $0xe8] sm:$0xff] }
 0x2c7   : > { %1525 = vmatprep.mubr.f32.mxu1 %v3488_v43 }
 0x2ca   : > { %1526 = vmatmul.mubr.f32.gmra.mxu1 %v3930_v16  ;;  %v3494_v16 = vld [vmem:[%s3762_s27 + $0x100] sm:$0xff] }
 0x2cb   : > { %1530 = vmatprep.mubr.f32.mxu1 %v3489_v53 }
 0x2ce   : > { %1531 = vmatmul.mubr.f32.gmra.mxu1 %v3936_v20  ;;  %v1669_v20 = vld [vmem:[%s5067_s4 + $0x8] sm:$0xff] }
 0x2cf   : > { %1535 = vmatprep.mubr.f32.mxu1 %v3490_v55  ;;  %3195 = vmatprep.subr.mxu0 %v1669_v20 }
 0x2d0   : > { %3357 = vmatprep.subr.mxu1 %v1669_v20  ;;  %3196 = vmatpush3.msra.mxu0 %v1669_v20 }
 0x2d1   : > { %3361 = vmatpush3.msra.mxu1 %v1669_v20 }
 0x2d2   : > { %1536 = vmatmul.mubr.f32.gmra.mxu1 %v3954_v35  ;;  %v3495_v35 = vld [vmem:[%s3762_s27 + $0x110] sm:$0xff] }
 0x2d3   : > { %1540 = vmatprep.mubr.f32.mxu1 %v3491_v2 }
 0x2d6   : > { %1541 = vmatmul.mubr.f32.gmra.mxu1 %v3960_v37  ;;  %v1668_v37 = vld [vmem:[%s5067_s4] sm:$0xff] }
 0x2d7   : > { %1545 = vmatprep.mubr.f32.mxu1 %v3492_v4  ;;  %3197 = vmatprep.subr.mxu0 %v1668_v37 }
 0x2d8   : > { %3198 = vmatpush3.msra.mxu0 %v1668_v37  ;;  %3358 = vmatprep.subr.mxu1 %v1668_v37 }
 0x2d9   : > { %3362 = vmatpush3.msra.mxu1 %v1668_v37 }
 0x2da   : > { %1546 = vmatmul.mubr.f32.gmra.mxu1 %v3983_v56  ;;  %v3496_v56 = vld [vmem:[%s3762_s27 + $0x120] sm:$0xff] }
 0x2db   : > { %1550 = vmatprep.mubr.f32.mxu1 %v3493_v19 }
 0x2de   : > { %1551 = vmatmul.mubr.f32.gmra.mxu1 %v3988_v58  ;;  %v3497_v58 = vld [vmem:[%s3762_s27 + $0x130] sm:$0xff] }
 0x2df   : > { %1555 = vmatprep.mubr.f32.mxu1 %v4004_v9  ;;  %v3498_v9 = vld [vmem:[%s3762_s27 + $0x140] sm:$0xff] }
 0x2e2   : > { %1556 = vmatmul.mubr.f32.gmra.mxu1 %v3494_v16 }
 0x2e3   : > { %1560 = vmatprep.mubr.f32.mxu1 %v4009_v11  ;;  %v3499_v11 = vld [vmem:[%s3762_s27 + $0x150] sm:$0xff] }
 0x2e6   : > { %1561 = vmatmul.mubr.f32.gmra.mxu1 %v3495_v35 }
 0x2e7   : > { %1565 = vmatprep.mubr.f32.mxu1 %v4027_v29  ;;  %v3500_v29 = vld [vmem:[%s3762_s27 + $0x160] sm:$0xff] }
 0x2ea   : > { %1566 = vmatmul.mubr.f32.gmra.mxu1 %v3496_v56 }
 0x2eb   : > { %1570 = vmatprep.mubr.f32.mxu1 %v4032_v33  ;;  %v3501_v33 = vld [vmem:[%s3762_s27 + $0x170] sm:$0xff] }
 0x2ee   : > { %1571 = vmatmul.mubr.f32.gmra.mxu1 %v3497_v58 }
 0x2ef   : > { %1575 = vmatprep.mubr.f32.mxu1 %v4050_v59  ;;  %v3502_v59 = vld [vmem:[%s3762_s27 + $0x180] sm:$0xff] }
 0x2f2   : > { %1576 = vmatmul.mubr.f32.gmra.mxu1 %v3498_v9 }
 0x2f3   : > { %1580 = vmatprep.mubr.f32.mxu1 %v4064_v13  ;;  %v3503_v13 = vld [vmem:[%s3762_s27 + $0x190] sm:$0xff] }
 0x2f6   : > { %1581 = vmatmul.mubr.f32.gmra.mxu1 %v3499_v11 }
 0x2f7   : > { %1585 = vmatprep.mubr.f32.mxu1 %v4083_v47  ;;  %v3504_v47 = vld [vmem:[%s3762_s27 + $0x1a0] sm:$0xff] }
 0x2fa   : > { %1586 = vmatmul.mubr.f32.gmra.mxu1 %v3500_v29 }
 0x2fb   : > { %1590 = vmatprep.mubr.f32.mxu1 %v4088_v49  ;;  %v3505_v49 = vld [vmem:[%s3762_s27 + $0x1b0] sm:$0xff] }
 0x2fe   : > { %1591 = vmatmul.mubr.f32.gmra.mxu1 %v3501_v33  ;;  %v5206_v33 = vld [vmem:[#allocation12_spill] sm:$0xff] }
 0x2ff   : > { %1595 = vmatprep.mubr.f32.mxu1 %v4104_v21  ;;  %v3506_v21 = vld [vmem:[%s3762_s27 + $0x1c0] sm:$0xff] }
 0x302   : > { %1596 = vmatmul.mubr.f32.gmra.mxu1 %v3502_v59 }
 0x303   : > { %1600 = vmatprep.mubr.f32.mxu1 %v4110_v17  ;;  %v3508_v17 = vld [vmem:[%s3762_s27 + $0x1e0] sm:$0xff] }
 0x306   : > { %1601 = vmatmul.mubr.f32.gmra.mxu1 %v3503_v13 }
 0x307   : > { %1605 = vmatprep.mubr.f32.mxu1 %v4127_v61  ;;  %v3509_v61 = vld [vmem:[%s3762_s27 + $0x1f0] sm:$0xff]  ;;  %s4948_s27 = scalar_lea.vmem [#allocation5], %s2860_s29 }
 0x308   : > { %s2767_s25 = sshll.u32 %s4948_s27, 4  ;;  %s5017_s25 = int_to_ptr.vmem [resolvable:$true] %s2767_s25 }
 0x309   : > { %s3538_s16 = scalar_lea.vmem %s5017_s25, 4096  ;;  %p3545_p7 = scmp.lt.s32.totalorder %s5017_s25, %s3543_s23 }
 0x30a   : > { %1606 = vmatmul.mubr.f32.gmra.mxu1 %v3504_v47  ;;  %v5207_v47 = vld [vmem:[#allocation13_spill] sm:$0xff]  ;;  %p3539_p12 = scmp.ne.s32.totalorder %s5017_s25, %s3538_s16  ;;  %p3546_p8 = scmp.lt.s32.totalorder %s3544_s20, %s3538_s16 }
 0x30b   : > { %1610 = vmatprep.mubr.f32.mxu1 %v4132_v62  ;;  %v2036_v62 = vld [vmem:[%s5069_s6 + $0x18] sm:$0xff] }
 0x30c   : > { %3299 = vmatprep.subr.mxu0 %v2036_v62  ;;  %p3540_p4 = pnand %p3539_p12, %p5275_p13  ;;  %p3547_p10 = por %p3546_p8, %p3545_p7 }
 0x30e   : > { %1611 = vmatmul.mubr.f32.gmra.mxu1 %v3505_v49  ;;  %p3541_p5 = pneg %p3540_p4 }
 0x30f   : > { %1615 = vmatprep.mubr.f32.mxu1 %v4149_v50 }
 0x310   : > { %p3548_p0 = pnand %p3547_p10, %p3541_p5 }
 0x312   : > { %1616 = vmatmul.mubr.f32.gmra.mxu1 %v3506_v21 }
 0x313   : > { %1620 = vmatprep.mubr.f32.mxu1 %v4154_v63 }
 0x316   : > { %1621 = vmatmul.mubr.f32.gmra.mxu1 %v3507_v15  ;;  %v5208_v15 = vld [vmem:[#allocation14_spill] sm:$0xff] }
 0x317   : > { %1625 = vmatprep.mubr.f32.mxu1 %v4169_v26 }
 0x31a   : > { %1626 = vmatmul.mubr.f32.gmra.mxu1 %v3508_v17 }
 0x31b   : > { %1630 = vmatprep.mubr.f32.mxu1 %v4174_v0  ;;  %v2035_v0 = vld [vmem:[%s5069_s6 + $0x10] sm:$0xff] }
 0x31e   : > { %1631 = vmatmul.mubr.f32.gmra.mxu1 %v3509_v61 }
 0x362   : > { %v1477_v50 = vpop.f32.mrf.mxu1 }
 0x363   : > { %v1636_v48 = vmul.f32 %v4244_v12, %v1477_v50 }
 0x364   : > { %v1479_v63 = vpop.f32.mrf.mxu1 }
 0x365   : > { %3199 = vmatprep.mubr.msk.f32.mxu0 %vm1679_vm1, %v1636_v48 }
 0x366   : > { %v1482_v40 = vpop.f32.mrf.mxu1 }
 0x367   : > { %v1637_v26 = vmul.f32 %v4247_v14, %v1482_v40  ;;  %v2033_v14 = vld [vmem:[%s5069_s6] sm:$0xff]  ;;  %v5210_v40 = vld [vmem:[#allocation16_spill] sm:$0xff] }
 0x368   : > { %v1484_v7 = vpop.f32.mrf.mxu1 }
 0x369   : > { %3200 = vmatmul.mubr.msk.f32.vlgmr.msra.gmra.mxu0 %vm1679_vm1, %v1637_v26 }
 0x36a   : > { %v1487_v32 = vpop.f32.mrf.mxu1  ;;  %3300 = vmatpush3.msra.mxu0 %v2036_v62  ;;  %v5209_v62 = vld [vmem:[#allocation15_spill] sm:$0xff] }
 0x36b   : > { %v1638_v12 = vmul.f32 %v4251_v8, %v1487_v32  ;;  %3301 = vmatprep.subr.mxu0 %v2035_v0  ;;  %v5211_v32 = vld [vmem:[#allocation17_spill] sm:$0xff] }
 0x36c   : > { %v1489_v23 = vpop.f32.mrf.mxu1  ;;  %3302 = vmatpush3.msra.mxu0 %v2035_v0 }
 0x36d   : > { %3202 = vmatprep.mubr.msk.f32.mxu0 %vm1679_vm1, %v1638_v12  ;;  %3303 = vmatprep.subr.mxu0 %v2034_v46 }
 0x36e   : > { %v1492_v31 = vpop.f32.mrf.mxu1  ;;  %3304 = vmatpush3.msra.mxu0 %v2034_v46 }
 0x36f   : > { %v1639_v41 = vmul.f32 %v4255_v27, %v1492_v31  ;;  %3305 = vmatprep.subr.mxu0 %v2033_v14 }
 0x370   : > { %v1494_v43 = vpop.f32.mrf.mxu1  ;;  %3306 = vmatpush3.msra.mxu0 %v2033_v14  ;;  %v5212_v14 = vld [vmem:[#allocation18_spill] sm:$0xff] }
 0x371   : > { %3203 = vmatmul.mubr.msk.f32.gmra.mxu0 %vm1679_vm1, %v1639_v41 }
 0x372   : > { %v1497_v8 = vpop.f32.mrf.mxu1 }
 0x373   : > { %v1640_v53 = vmul.f32 %v4259_v54, %v1497_v8  ;;  %v5213_v8 = vld [vmem:[#allocation19_spill] sm:$0xff] }
 0x374   : > { %v1499_v55 = vpop.f32.mrf.mxu1 }
 0x375   : > { %3205 = vmatprep.mubr.msk.f32.mxu0 %vm1679_vm1, %v1640_v53 }
 0x376   : > { %v1502_v2 = vpop.f32.mrf.mxu1 }
 0x377   : > { %v1641_v4 = vmul.f32 %v4263_v36, %v1502_v2 }
 0x378   : > { %v1504_v19 = vpop.f32.mrf.mxu1 }
 0x379   : > { %3206 = vmatmul.mubr.msk.f32.gmra.mxu0 %vm1679_vm1, %v1641_v4  ;;  %v5214_v4 = vld [vmem:[#allocation49_spill] sm:$0xff] }
 0x37a   : > { %v1507_v16 = vpop.f32.mrf.mxu1  ;;  %v5215_v19 = vmax.f32 %v5214_v4, 0.0  ;;  %v5242_v4 = vld [vmem:[#allocation38_spill] sm:$0xff] }
 0x37b   : > { %v1642_v27 = vmul.f32 %v4267_v38, %v1507_v16  ;;  %v5216_v16 = vld [vmem:[#allocation20_spill] sm:$0xff] }
 0x37c   : > { %v1509_v20 = vpop.f32.mrf.mxu1 }
 0x37d   : > { %3208 = vmatprep.mubr.msk.f32.mxu0 %vm1679_vm1, %v1642_v27 }
 0x37e   : > { %v1512_v35 = vpop.f32.mrf.mxu1 }
 0x37f   : > { %v1643_v37 = vmul.f32 %v4271_v39, %v1512_v35  ;;  %v2038_v35 = vld [vmem:[%s5070_s7 + $0x8] sm:$0xff] }
 0x380   : > { %v1514_v56 = vpop.f32.mrf.mxu1  ;;  %3247 = vmatprep.subr.mxu1 %v2038_v35 }
 0x381   : > { %3209 = vmatmul.mubr.msk.f32.gmra.mxu0 %vm1679_vm1, %v1643_v37  ;;  %v5217_v37 = vld [vmem:[#allocation48_spill] sm:$0xff] }
 0x382   : > { %v1517_v54 = vpop.f32.mrf.mxu1  ;;  %v5218_v56 = vmax.f32 %v5217_v37, 0.0 }
 0x383   : > { %v1644_v58 = vmul.f32 %v4275_v44, %v1517_v54 }
 0x384   : > { %v1519_v9 = vpop.f32.mrf.mxu1 }
 0x385   : > { %3211 = vmatprep.mubr.msk.f32.mxu0 %vm1679_vm1, %v1644_v58  ;;  %v5219_v58 = vld [vmem:[#allocation47_spill] sm:$0xff] }
 0x386   : > { %v1522_v36 = vpop.f32.mrf.mxu1  ;;  %v5220_v9 = vmax.f32 %v5219_v58, 0.0 }
 0x387   : > { %v1645_v11 = vmul.f32 %v4279_v3, %v1522_v36  ;;  %v5221_v36 = vld [vmem:[#allocation21_spill] sm:$0xff] }
 0x388   : > { %v1524_v29 = vpop.f32.mrf.mxu1 }
 0x389   : > { %3212 = vmatmul.mubr.msk.f32.gmra.mxu0 %vm1679_vm1, %v1645_v11 }
 0x38a   : > { %v1527_v38 = vpop.f32.mrf.mxu1 }
 0x38b   : > { %v1646_v59 = vmul.f32 %v5206_v33, %v1527_v38  ;;  %v2037_v38 = vld [vmem:[%s5070_s7] sm:$0xff] }
 0x38c   : > { %v1529_v13 = vpop.f32.mrf.mxu1  ;;  %v5222_v33 = vld [vmem:[#allocation46_spill] sm:$0xff] }
 0x38d   : > { %3214 = vmatprep.mubr.msk.f32.mxu0 %vm1679_vm1, %v1646_v59  ;;  %v5223_v59 = vmax.f32 %v5222_v33, 0.0 }
 0x38e   : > { %v1532_v39 = vpop.f32.mrf.mxu1 }
 0x38f   : > { %v1647_v49 = vmul.f32 %v5207_v47, %v1532_v39  ;;  %v5224_v39 = vld [vmem:[#allocation45_spill] sm:$0xff] }
 0x390   : > { %v1534_v21 = vpop.f32.mrf.mxu1  ;;  %v5225_v47 = vmax.f32 %v5224_v39, 0.0 }
 0x391   : > { %3215 = vmatmul.mubr.msk.f32.gmra.mxu0 %vm1679_vm1, %v1647_v49  ;;  %v5226_v49 = vld [vmem:[#allocation22_spill] sm:$0xff] }
 0x392   : > { %v1537_v44 = vpop.f32.mrf.mxu1 }
 0x393   : > { %v1648_v17 = vmul.f32 %v5208_v15, %v1537_v44  ;;  %v5227_v15 = vld [vmem:[#allocation44_spill] sm:$0xff] }
 0x394   : > { %v1539_v61 = vpop.f32.mrf.mxu1 }
 0x395   : > { %3217 = vmatprep.mubr.msk.f32.mxu0 %vm1679_vm1, %v1648_v17  ;;  %v5228_v17 = vmax.f32 %v5227_v15, 0.0 }
 0x396   : > { %v1542_v3 = vpop.f32.mrf.mxu1 }
 0x397   : > { %v1649_v50 = vmul.f32 %v5209_v62, %v1542_v3  ;;  %v5229_v3 = vld [vmem:[#allocation43_spill] sm:$0xff] }
 0x398   : > { %v1544_v48 = vpop.f32.mrf.mxu1  ;;  %v5230_v62 = vmax.f32 %v5229_v3, 0.0 }
 0x399   : > { %3218 = vmatmul.mubr.msk.f32.gmra.mxu0 %vm1679_vm1, %v1649_v50  ;;  %v5231_v50 = vld [vmem:[#allocation23_spill] sm:$0xff] }
 0x39a   : > { %v1547_v63 = vpop.f32.mrf.mxu1 }
 0x39b   : > { %v1650_v26 = vmul.f32 %v5210_v40, %v1547_v63  ;;  %v5232_v40 = vld [vmem:[#allocation42_spill] sm:$0xff] }
 0x39c   : > { %v1549_v7 = vpop.f32.mrf.mxu1 }
 0x39d   : > { %3220 = vmatprep.mubr.msk.f32.mxu0 %vm1679_vm1, %v1650_v26  ;;  %v5233_v26 = vmax.f32 %v5232_v40, 0.0 }
 0x39e   : > { %v1552_v0 = vpop.f32.mrf.mxu1 }
 0x39f   : > { %v1651_v46 = vmul.f32 %v5211_v32, %v1552_v0  ;;  %v5234_v0 = vld [vmem:[#allocation41_spill] sm:$0xff] }
 0x3a0   : > { %v1554_v12 = vpop.f32.mrf.mxu1  ;;  %v5235_v32 = vmax.f32 %v5234_v0, 0.0 }
 0x3a1   : > { %3221 = vmatmul.mubr.msk.f32.gmra.mxu0 %vm1679_vm1, %v1651_v46  ;;  %v5236_v46 = vld [vmem:[#allocation24_spill] sm:$0xff] }
 0x3a2   : > { %v1557_v23 = vpop.f32.mrf.mxu1 }
 0x3a3   : > { %v1652_v31 = vmul.f32 %v5212_v14, %v1557_v23  ;;  %v5237_v14 = vld [vmem:[#allocation40_spill] sm:$0xff] }
 0x3a4   : > { %v1559_v41 = vpop.f32.mrf.mxu1 }
 0x3a5   : > { %3223 = vmatprep.mubr.msk.f32.mxu0 %vm1679_vm1, %v1652_v31  ;;  %v5238_v31 = vmax.f32 %v5237_v14, 0.0 }
 0x3a6   : > { %v1562_v43 = vpop.f32.mrf.mxu1 }
 0x3a7   : > { %v1653_v53 = vmul.f32 %v5213_v8, %v1562_v43  ;;  %v5239_v43 = vld [vmem:[#allocation39_spill] sm:$0xff] }
 0x3a8   : > { %v1564_v55 = vpop.f32.mrf.mxu1  ;;  %v5240_v8 = vmax.f32 %v5239_v43, 0.0 }
 0x3a9   : > { %3224 = vmatmul.mubr.msk.f32.gmra.mxu0 %vm1679_vm1, %v1653_v53  ;;  %v5241_v53 = vld [vmem:[#allocation25_spill] sm:$0xff] }
 0x3aa   : > { %v1567_v2 = vpop.f32.mrf.mxu1  ;;  %3307 = vmatprep.mubr.msk.f32.mxu0 %vm1679_vm1, %v5215_v19  ;;  %v5243_v19 = vmax.f32 %v5242_v4, 0.0 }
 0x3ab   : > { %v1654_v27 = vmul.f32 %v5216_v16, %v1567_v2 }
 0x3ac   : > { %v1569_v20 = vpop.f32.mrf.mxu1 }
 0x3ad   : > { %3226 = vmatprep.mubr.msk.f32.mxu1 %vm1679_vm1, %v1654_v27  ;;  %3308 = vmatmul.mubr.msk.f32.vlgmr.msra.gmra.mxu0 %vm1679_vm1, %v5218_v56  ;;  %v5244_v27 = vld [vmem:[#allocation37_spill] sm:$0xff] }
 0x3ae   : > { %v1572_v54 = vpop.f32.mrf.mxu1  ;;  %3310 = vmatprep.mubr.msk.f32.mxu0 %vm1679_vm1, %v5220_v9  ;;  %v5245_v20 = vmax.f32 %v5244_v27, 0.0 }
 0x3af   : > { %v1655_v11 = vmul.f32 %v5221_v36, %v1572_v54  ;;  %v5247_v54 = vld [vmem:[#allocation35_spill] sm:$0xff]  ;;  %v5249_v36 = vld [vmem:[#allocation36_spill] sm:$0xff] }
 0x3b0   : > { %v1574_v29 = vpop.f32.mrf.mxu1  ;;  %v5248_v58 = vmax.f32 %v5247_v54, 0.0 }
 0x3b1   : > { %3227 = vmatmul.mubr.msk.f32.vlgmr.msra.gmra.mxu1 %vm1679_vm1, %v1655_v11  ;;  %3311 = vmatmul.mubr.msk.f32.gmra.mxu0 %vm1679_vm1, %v5223_v59  ;;  %v5250_v11 = vmax.f32 %v5249_v36, 0.0  ;;  %v5251_v29 = vld [vmem:[#allocation27_spill] sm:$0xff]  ;;  %v5252_v59 = vld [vmem:[#allocation34_spill] sm:$0xff] }
 0x3b2   : > { %v1577_v13 = vpop.f32.mrf.mxu1  ;;  %3313 = vmatprep.mubr.msk.f32.mxu0 %vm1679_vm1, %v5225_v47  ;;  %3248 = vmatpush3.msra.mxu1 %v2038_v35  ;;  %v5246_v35 = vld [vmem:[#allocation26_spill] sm:$0xff]  ;;  %v5254_v47 = vld [vmem:[#allocation28_spill] sm:$0xff] }
 0x3b3   : > { %v1656_v21 = vmul.f32 %v5226_v49, %v1577_v13  ;;  %3249 = vmatprep.subr.mxu1 %v2037_v38  ;;  %v5253_v13 = vmax.f32 %v5252_v59, 0.0 }
 0x3b4   : > { %v1579_v44 = vpop.f32.mrf.mxu1  ;;  %3250 = vmatpush3.msra.mxu1 %v2037_v38 }
 0x3b5   : > { %3229 = vmatprep.mubr.msk.f32.mxu1 %vm1679_vm1, %v1656_v21  ;;  %3314 = vmatmul.mubr.msk.f32.gmra.mxu0 %vm1679_vm1, %v5228_v17  ;;  %v5255_v44 = vmax.f32 %v4595_v22, 0.0  ;;  %v5256_v17 = vmax.f32 %v4587_v10, 0.0  ;;  %v5260_v22 = vld [vmem:[#allocation30_spill] sm:$0xff]  ;;  %v5261_v10 = vmax.f32 %v4564_v25, 0.0  ;;  %v5266_v25 = vld [vmem:[#allocation32_spill] sm:$0xff] }
 0x3b6   : > { %v1582_v61 = vpop.f32.mrf.mxu1  ;;  %3316 = vmatprep.mubr.msk.f32.mxu0 %vm1679_vm1, %v5230_v62 }
 0x3b7   : > { %v1657_v48 = vmul.f32 %v5231_v50, %v1582_v61  ;;  %v5257_v61 = vld [vmem:[#allocation29_spill] sm:$0xff]  ;;  %v5259_v50 = vmax.f32 %v4571_v5, 0.0  ;;  %v5264_v5 = vmax.f32 %v4550_v18, 0.0 }
 0x3b8   : > { %v1584_v63 = vpop.f32.mrf.mxu1  ;;  %v5269_v18 = vld [vmem:[#allocation33_spill] sm:$0xff] }
 0x3b9   : > { %3230 = vmatmul.mubr.msk.f32.gmra.mxu1 %vm1679_vm1, %v1657_v48  ;;  %3317 = vmatmul.mubr.msk.f32.gmra.mxu0 %vm1679_vm1, %v5233_v26  ;;  %v5262_v26 = vmax.f32 %v4557_v6, 0.0  ;;  %v5267_v6 = vmax.f32 %v4536_v28, 0.0  ;;  %v5272_v28 = vmax.f32 %v4508_v57, 0.0 }
 0x3ba   : > { %v1587_v7 = vpop.f32.mrf.mxu1  ;;  %3319 = vmatprep.mubr.msk.f32.mxu0 %vm1679_vm1, %v5235_v32 }
 0x3bb   : > { %v1658_v12 = vmul.f32 %v5236_v46, %v1587_v7  ;;  %v5265_v46 = vmax.f32 %v4543_v52, 0.0  ;;  %v5270_v52 = vmax.f32 %v4522_v34, 0.0  ;;  %v4875_v34 = vld [vmem:[%s5068_s5] ss:$0 sm:$0xff] }
 0x3bc   : > { %v1589_v23 = vpop.f32.mrf.mxu1 }
 0x3bd   : > { %3232 = vmatprep.mubr.msk.f32.mxu1 %vm1679_vm1, %v1658_v12  ;;  %3320 = vmatmul.mubr.msk.f32.gmra.mxu0 %vm1679_vm1, %v5238_v31  ;;  %v5268_v31 = vmax.f32 %v4529_v60, 0.0  ;;  %v5273_v60 = vmax.f32 %v4512_v1, 0.0 }
 0x3be   : > { %v1592_v41 = vpop.f32.mrf.mxu1  ;;  %3322 = vmatprep.mubr.msk.f32.mxu0 %vm1679_vm1, %v5240_v8  ;;  %v5271_v8 = vmax.f32 %v4515_v42, 0.0 }
 0x3bf   : > { %v1659_v55 = vmul.f32 %v5241_v53, %v1592_v41  ;;  %v5274_v53 = vmax.f32 %v4505_v30, 0.0 }
 0x3c0   : > { %v1594_v2 = vpop.f32.mrf.mxu1 }
 0x3c1   : > { %3233 = vmatmul.mubr.msk.f32.gmra.mxu1 %vm1679_vm1, %v1659_v55  ;;  %3323 = vmatmul.mubr.msk.f32.gmra.mxu0 %vm1679_vm1, %v5243_v19 }
 0x3c2   : > { %v1597_v16 = vpop.f32.mrf.mxu1  ;;  %3325 = vmatprep.mubr.msk.f32.mxu0 %vm1679_vm1, %v5245_v20 }
 0x3c3   : > { %v1660_v37 = vmul.f32 %v5246_v35, %v1597_v16 }
 0x3c4   : > { %v1599_v56 = vpop.f32.mrf.mxu1 }
 0x3c5   : > { %3235 = vmatprep.mubr.msk.f32.mxu1 %vm1679_vm1, %v1660_v37  ;;  %3326 = vmatmul.mubr.msk.f32.gmra.mxu0 %vm1679_vm1, %v5248_v58 }
 0x3c6   : > { %v1602_v9 = vpop.f32.mrf.mxu1  ;;  %3328 = vmatprep.mubr.msk.f32.mxu0 %vm1679_vm1, %v5250_v11 }
 0x3c7   : > { %v1661_v38 = vmul.f32 %v5251_v29, %v1602_v9 }
 0x3c8   : > { %v1604_v33 = vpop.f32.mrf.mxu1 }
 0x3c9   : > { %3236 = vmatmul.mubr.msk.f32.gmra.mxu1 %vm1679_vm1, %v1661_v38  ;;  %3329 = vmatmul.mubr.msk.f32.gmra.mxu0 %vm1679_vm1, %v5253_v13 }
 0x3ca   : > { %v1607_v39 = vpop.f32.mrf.mxu1  ;;  %3331 = vmatprep.mubr.msk.f32.mxu0 %vm1679_vm1, %v1395_v24  ;;  %v5258_v24 = vmax.f32 %v4579_v51, 0.0  ;;  %v5263_v51 = vld [vmem:[#allocation31_spill] sm:$0xff] }
 0x3cb   : > { %v1662_v49 = vmul.f32 %v5254_v47, %v1607_v39 }
 0x3cc   : > { %v1609_v21 = vpop.f32.mrf.mxu1 }
 0x3cd   : > { %3238 = vmatprep.mubr.msk.f32.mxu1 %vm1679_vm1, %v1662_v49  ;;  %3332 = vmatmul.mubr.msk.f32.gmra.mxu0 %vm1679_vm1, %v5255_v44 }
 0x3ce   : > { %v1612_v15 = vpop.f32.mrf.mxu1  ;;  %3334 = vmatprep.mubr.msk.f32.mxu0 %vm1679_vm1, %v5256_v17 }
 0x3cf   : > { %v1663_v3 = vmul.f32 %v5257_v61, %v1612_v15 }
 0x3d0   : > { %v1614_v62 = vpop.f32.mrf.mxu1 }
 0x3d1   : > { %3239 = vmatmul.mubr.msk.f32.gmra.mxu1 %vm1679_vm1, %v1663_v3  ;;  %3335 = vmatmul.mubr.msk.f32.gmra.mxu0 %vm1679_vm1, %v5258_v24 }
 0x3d2   : > { %v1617_v45 = vpop.f32.mrf.mxu1  ;;  %3337 = vmatprep.mubr.msk.f32.mxu0 %vm1679_vm1, %v5259_v50 }
 0x3d3   : > { %v1664_v48 = vmul.f32 %v5260_v22, %v1617_v45 }
 0x3d4   : > { %v1619_v63 = vpop.f32.mrf.mxu1 }
 0x3d5   : > { %3241 = vmatprep.mubr.msk.f32.mxu1 %vm1679_vm1, %v1664_v48  ;;  %3338 = vmatmul.mubr.msk.f32.gmra.mxu0 %vm1679_vm1, %v5261_v10 }
 0x3d6   : > { %v1622_v40 = vpop.f32.mrf.mxu1  ;;  %3340 = vmatprep.mubr.msk.f32.mxu0 %vm1679_vm1, %v5262_v26 }
 0x3d7   : > { %v1665_v7 = vmul.f32 %v5263_v51, %v1622_v40 }
 0x3d8   : > { %v1624_v0 = vpop.f32.mrf.mxu1 }
 0x3d9   : > { %3242 = vmatmul.mubr.msk.f32.gmra.mxu1 %vm1679_vm1, %v1665_v7  ;;  %3341 = vmatmul.mubr.msk.f32.gmra.mxu0 %vm1679_vm1, %v5264_v5 }
 0x3da   : > { %v1627_v32 = vpop.f32.mrf.mxu1  ;;  %3343 = vmatprep.mubr.msk.f32.mxu0 %vm1679_vm1, %v5265_v46 }
 0x3db   : > { %v1666_v12 = vmul.f32 %v5266_v25, %v1627_v32 }
 0x3dc   : > { %v1629_v23 = vpop.f32.mrf.mxu1 }
 0x3dd   : > { %3244 = vmatprep.mubr.msk.f32.mxu1 %vm1679_vm1, %v1666_v12  ;;  %3344 = vmatmul.mubr.msk.f32.gmra.mxu0 %vm1679_vm1, %v5267_v6 }
 0x3de   : > { %v1632_v14 = vpop.f32.mrf.mxu1  ;;  %3346 = vmatprep.mubr.msk.f32.mxu0 %vm1679_vm1, %v5268_v31 }
 0x3df   : > { %v1667_v41 = vmul.f32 %v5269_v18, %v1632_v14 }
 0x3e0   : > { %v1634_v43 = vpop.f32.mrf.mxu1 }
 0x3e1   : > { %3245 = vmatmul.mubr.msk.f32.gmra.mxu1 %vm1679_vm1, %v1667_v41  ;;  %3347 = vmatmul.mubr.msk.f32.gmra.mxu0 %vm1679_vm1, %v5270_v52 }
 0x3e2   : > { %3349 = vmatprep.mubr.msk.f32.mxu0 %vm1679_vm1, %v5271_v8 }
 0x3e5   : > { %3350 = vmatmul.mubr.msk.f32.gmra.mxu0 %vm1679_vm1, %v5272_v28 }
 0x3e6   : > { %3352 = vmatprep.mubr.msk.f32.mxu0 %vm1679_vm1, %v5273_v60 }
 0x3e9   : > { %3353 = vmatmul.mubr.msk.f32.gmra.mxu0 %vm1679_vm1, %v5274_v53 }
 0x429   : > { %v3201_v42 = vpop.f32.mrf.mxu0 }
 0x42a   : > { %v1848_v55 = vadd.f32 %v3201_v42, %v4875_v34 }
 0x42b   : > { %v1842_v2 = vpop.f32.mrf.mxu0 }
 0x42c   : > { %v1843_v57 = vadd.f32 %v4875_v34, %v1842_v2  ;;  %v2002_v1 = vmax.f32 %v1848_v55, 0.0 }
 0x42e   : > { %v2001_v4 = vmax.f32 %v1843_v57, 0.0 }
 0x430   : > { %3251 = vmatprep.mubr.msk.f32.mxu1 %vm2039_vm2, %v2001_v4 }
 0x431   : > { %v3204_v19 = vpop.f32.mrf.mxu0  ;;  %3252 = vmatmul.mubr.msk.f32.vlgmr.msra.gmra.mxu1 %vm2039_vm2, %v2002_v1 }
 0x432   : > { %v1858_v30 = vadd.f32 %v3204_v19, %v4875_v34 }
 0x433   : > { %v1852_v16 = vpop.f32.mrf.mxu0 }
 0x434   : > { %v1853_v27 = vadd.f32 %v4875_v34, %v1852_v16  ;;  %v2004_v35 = vmax.f32 %v1858_v30, 0.0 }
 0x436   : > { %v2003_v20 = vmax.f32 %v1853_v27, 0.0 }
 0x438   : > { %3254 = vmatprep.mubr.msk.f32.mxu1 %vm2039_vm2, %v2003_v20 }
 0x439   : > { %v3207_v37 = vpop.f32.mrf.mxu0  ;;  %3255 = vmatmul.mubr.msk.f32.gmra.mxu1 %vm2039_vm2, %v2004_v35 }
 0x43a   : > { %v1868_v56 = vadd.f32 %v3207_v37, %v4875_v34 }
 0x43b   : > { %v1862_v54 = vpop.f32.mrf.mxu0 }
 0x43c   : > { %v1863_v58 = vadd.f32 %v4875_v34, %v1862_v54  ;;  %v2006_v36 = vmax.f32 %v1868_v56, 0.0 }
 0x43e   : > { %v2005_v9 = vmax.f32 %v1863_v58, 0.0 }
 0x440   : > { %3257 = vmatprep.mubr.msk.f32.mxu1 %vm2039_vm2, %v2005_v9 }
 0x441   : > { %v3210_v11 = vpop.f32.mrf.mxu0  ;;  %3258 = vmatmul.mubr.msk.f32.gmra.mxu1 %vm2039_vm2, %v2006_v36 }
 0x442   : > { %v1878_v29 = vadd.f32 %v3210_v11, %v4875_v34 }
 0x443   : > { %v1872_v38 = vpop.f32.mrf.mxu0 }
 0x444   : > { %v1873_v33 = vadd.f32 %v4875_v34, %v1872_v38  ;;  %v2008_v13 = vmax.f32 %v1878_v29, 0.0 }
 0x446   : > { %v2007_v59 = vmax.f32 %v1873_v33, 0.0 }
 0x448   : > { %3260 = vmatprep.mubr.msk.f32.mxu1 %vm2039_vm2, %v2007_v59 }
 0x449   : > { %v3213_v39 = vpop.f32.mrf.mxu0  ;;  %3261 = vmatmul.mubr.msk.f32.gmra.mxu1 %vm2039_vm2, %v2008_v13 }
 0x44a   : > { %v1888_v47 = vadd.f32 %v3213_v39, %v4875_v34 }
 0x44b   : > { %v1882_v49 = vpop.f32.mrf.mxu0 }
 0x44c   : > { %v1883_v21 = vadd.f32 %v4875_v34, %v1882_v49  ;;  %v2010_v15 = vmax.f32 %v1888_v47, 0.0 }
 0x44e   : > { %v2009_v44 = vmax.f32 %v1883_v21, 0.0 }
 0x450   : > { %3263 = vmatprep.mubr.msk.f32.mxu1 %vm2039_vm2, %v2009_v44 }
 0x451   : > { %v3216_v17 = vpop.f32.mrf.mxu0  ;;  %3264 = vmatmul.mubr.msk.f32.gmra.mxu1 %vm2039_vm2, %v2010_v15 }
 0x452   : > { %v1898_v61 = vadd.f32 %v3216_v17, %v4875_v34 }
 0x453   : > { %v1892_v3 = vpop.f32.mrf.mxu0 }
 0x454   : > { %v1893_v62 = vadd.f32 %v4875_v34, %v1892_v3  ;;  %v2012_v45 = vmax.f32 %v1898_v61, 0.0 }
 0x456   : > { %v2011_v24 = vmax.f32 %v1893_v62, 0.0 }
 0x458   : > { %3266 = vmatprep.mubr.msk.f32.mxu1 %vm2039_vm2, %v2011_v24 }
 0x459   : > { %v3219_v50 = vpop.f32.mrf.mxu0  ;;  %3267 = vmatmul.mubr.msk.f32.gmra.mxu1 %vm2039_vm2, %v2012_v45  ;;  %v4945_v45 = vld [vmem:[%s5071_s8] ss:$0 sm:$0xff] }
 0x45a   : > { %v1908_v22 = vadd.f32 %v3219_v50, %v4875_v34 }
 0x45b   : > { %v1902_v48 = vpop.f32.mrf.mxu0 }
 0x45c   : > { %v1903_v63 = vadd.f32 %v4875_v34, %v1902_v48  ;;  %v2014_v40 = vmax.f32 %v1908_v22, 0.0 }
 0x45e   : > { %v2013_v10 = vmax.f32 %v1903_v63, 0.0 }
 0x460   : > { %3269 = vmatprep.mubr.msk.f32.mxu1 %vm2039_vm2, %v2013_v10 }
 0x461   : > { %v3222_v26 = vpop.f32.mrf.mxu0  ;;  %3270 = vmatmul.mubr.msk.f32.gmra.mxu1 %vm2039_vm2, %v2014_v40 }
 0x462   : > { %v1918_v51 = vadd.f32 %v3222_v26, %v4875_v34 }
 0x463   : > { %v1912_v7 = vpop.f32.mrf.mxu0 }
 0x464   : > { %v1913_v0 = vadd.f32 %v4875_v34, %v1912_v7  ;;  %v2016_v32 = vmax.f32 %v1918_v51, 0.0 }
 0x466   : > { %v2015_v5 = vmax.f32 %v1913_v0, 0.0 }
 0x468   : > { %3272 = vmatprep.mubr.msk.f32.mxu1 %vm2039_vm2, %v2015_v5 }
 0x469   : > { %v3225_v46 = vpop.f32.mrf.mxu0  ;;  %3273 = vmatmul.mubr.msk.f32.gmra.mxu1 %vm2039_vm2, %v2016_v32 }
 0x46a   : > { %v1928_v25 = vadd.f32 %v3225_v46, %v4875_v34 }
 0x46b   : > { %v1922_v12 = vpop.f32.mrf.mxu0 }
 0x46c   : > { %v1923_v23 = vadd.f32 %v4875_v34, %v1922_v12  ;;  %v2018_v14 = vmax.f32 %v1928_v25, 0.0 }
 0x46d   : > { %v3309_v62 = vpop.f32.mrf.mxu0 }
 0x46e   : > { %v2017_v6 = vmax.f32 %v1923_v23, 0.0 }
 0x46f   : > { %v2523_v22 = vpop.f32.mrf.mxu0 }
 0x470   : > { %3275 = vmatprep.mubr.msk.f32.mxu1 %vm2039_vm2, %v2017_v6 }
 0x471   : > { %v3228_v31 = vpop.f32.mrf.mxu1  ;;  %3276 = vmatmul.mubr.msk.f32.gmra.mxu1 %vm2039_vm2, %v2018_v14  ;;  %v3312_v40 = vpop.f32.mrf.mxu0 }
 0x472   : > { %v1938_v18 = vadd.f32 %v3228_v31, %v4875_v34 }
 0x473   : > { %v1932_v41 = vpop.f32.mrf.mxu1  ;;  %v2533_v7 = vpop.f32.mrf.mxu0 }
 0x474   : > { %v1933_v43 = vadd.f32 %v4875_v34, %v1932_v41  ;;  %v2020_v8 = vmax.f32 %v1938_v18, 0.0 }
 0x475   : > { %v3315_v25 = vpop.f32.mrf.mxu0 }
 0x476   : > { %v2019_v52 = vmax.f32 %v1933_v43, 0.0 }
 0x477   : > { %v2543_v6 = vpop.f32.mrf.mxu0 }
 0x478   : > { %3278 = vmatprep.mubr.msk.f32.mxu1 %vm2039_vm2, %v2019_v52 }
 0x479   : > { %v3231_v28 = vpop.f32.mrf.mxu1  ;;  %3279 = vmatmul.mubr.msk.f32.gmra.mxu1 %vm2039_vm2, %v2020_v8  ;;  %v3318_v43 = vpop.f32.mrf.mxu0 }
 0x47a   : > { %v1948_v60 = vadd.f32 %v3231_v28, %v4875_v34 }
 0x47b   : > { %v1942_v53 = vpop.f32.mrf.mxu1  ;;  %v2553_v28 = vpop.f32.mrf.mxu0 }
 0x47c   : > { %v1943_v42 = vadd.f32 %v4875_v34, %v1942_v53  ;;  %v2022_v2 = vmax.f32 %v1948_v60, 0.0 }
 0x47e   : > { %v2021_v55 = vmax.f32 %v1943_v42, 0.0 }
 0x480   : > { %3281 = vmatprep.mubr.msk.f32.mxu1 %vm2039_vm2, %v2021_v55 }
 0x481   : > { %v3234_v57 = vpop.f32.mrf.mxu1  ;;  %3282 = vmatmul.mubr.msk.f32.gmra.mxu1 %vm2039_vm2, %v2022_v2  ;;  %v3321_v2 = vpop.f32.mrf.mxu0 }
 0x482   : > { %v1958_v4 = vadd.f32 %v3234_v57, %v4875_v34 }
 0x483   : > { %v1952_v1 = vpop.f32.mrf.mxu1 }
 0x484   : > { %v1953_v19 = vadd.f32 %v4875_v34, %v1952_v1  ;;  %v2024_v16 = vmax.f32 %v1958_v4, 0.0  ;;  %v2563_v1 = vpop.f32.mrf.mxu0 }
 0x486   : > { %v2023_v30 = vmax.f32 %v1953_v19, 0.0 }
 0x488   : > { %3284 = vmatprep.mubr.msk.f32.mxu1 %vm2039_vm2, %v2023_v30 }
 0x489   : > { %v3237_v27 = vpop.f32.mrf.mxu1  ;;  %3285 = vmatmul.mubr.msk.f32.gmra.mxu1 %vm2039_vm2, %v2024_v16 }
 0x48a   : > { %v1968_v20 = vadd.f32 %v3237_v27, %v4875_v34 }
 0x48b   : > { %v1962_v35 = vpop.f32.mrf.mxu1 }
 0x48c   : > { %v1963_v37 = vadd.f32 %v4875_v34, %v1962_v35  ;;  %v2026_v54 = vmax.f32 %v1968_v20, 0.0  ;;  %v3324_v20 = vpop.f32.mrf.mxu0 }
 0x48e   : > { %v2025_v56 = vmax.f32 %v1963_v37, 0.0 }
 0x490   : > { %3287 = vmatprep.mubr.msk.f32.mxu1 %vm2039_vm2, %v2025_v56  ;;  %v2573_v56 = vpop.f32.mrf.mxu0 }
 0x491   : > { %v3240_v58 = vpop.f32.mrf.mxu1  ;;  %3288 = vmatmul.mubr.msk.f32.gmra.mxu1 %vm2039_vm2, %v2026_v54 }
 0x492   : > { %v1978_v9 = vadd.f32 %v3240_v58, %v4875_v34 }
 0x493   : > { %v1972_v36 = vpop.f32.mrf.mxu1 }
 0x494   : > { %v1973_v11 = vadd.f32 %v4875_v34, %v1972_v36  ;;  %v2028_v38 = vmax.f32 %v1978_v9, 0.0 }
 0x496   : > { %v2027_v29 = vmax.f32 %v1973_v11, 0.0  ;;  %v3327_v11 = vpop.f32.mrf.mxu0 }
 0x498   : > { %3290 = vmatprep.mubr.msk.f32.mxu1 %vm2039_vm2, %v2027_v29 }
 0x499   : > { %v3243_v33 = vpop.f32.mrf.mxu1  ;;  %3291 = vmatmul.mubr.msk.f32.gmra.mxu1 %vm2039_vm2, %v2028_v38 }
 0x49a   : > { %v1988_v59 = vadd.f32 %v3243_v33, %v4875_v34  ;;  %v2583_v33 = vpop.f32.mrf.mxu0 }
 0x49b   : > { %v1982_v13 = vpop.f32.mrf.mxu1 }
 0x49c   : > { %v1983_v39 = vadd.f32 %v4875_v34, %v1982_v13  ;;  %v2030_v49 = vmax.f32 %v1988_v59, 0.0 }
 0x49e   : > { %v2029_v47 = vmax.f32 %v1983_v39, 0.0 }
 0x4a0   : > { %3293 = vmatprep.mubr.msk.f32.mxu1 %vm2039_vm2, %v2029_v47 }
 0x4a1   : > { %v3246_v21 = vpop.f32.mrf.mxu1  ;;  %3294 = vmatmul.mubr.msk.f32.gmra.mxu1 %vm2039_vm2, %v2030_v49  ;;  %v3330_v49 = vpop.f32.mrf.mxu0 }
 0x4a2   : > { %v1998_v44 = vadd.f32 %v3246_v21, %v4875_v34 }
 0x4a3   : > { %v1992_v15 = vpop.f32.mrf.mxu1 }
 0x4a4   : > { %v1993_v17 = vadd.f32 %v4875_v34, %v1992_v15  ;;  %v2032_v3 = vmax.f32 %v1998_v44, 0.0  ;;  %v2593_v15 = vpop.f32.mrf.mxu0 }
 0x4a6   : > { %v2031_v61 = vmax.f32 %v1993_v17, 0.0 }
 0x4a8   : > { %3296 = vmatprep.mubr.msk.f32.mxu1 %vm2039_vm2, %v2031_v61 }
 0x4a9   : > { %3297 = vmatmul.mubr.msk.f32.gmra.mxu1 %vm2039_vm2, %v2032_v3 }
 0x4f1   : > { %v3253_v24 = vpop.f32.mrf.mxu1 }
 0x4f2   : > { %v2529_v50 = vadd.f32 %v3309_v62, %v3253_v24  ;;  %v3333_v24 = vpop.f32.mrf.mxu0 }
 0x4f3   : > { %v2202_v48 = vpop.f32.mrf.mxu1 }
 0x4f4   : > { %v2690_v63 = vadd.f32 %v4945_v45, %v2529_v50  ;;  %v2524_v34 = vadd.f32 %v2523_v22, %v2202_v48  ;;  %v2603_v48 = vpop.f32.mrf.mxu0 }
 0x4f6   : > { %2722 = vst [vmem:[%s4948_s27 + $0x8] sm:$0xff] %v2690_v63  ;;  %v2689_v10 = vadd.f32 %v4945_v45, %v2524_v34 }
 0x4f8   : > { %2721 = vst [vmem:[%s4948_s27] sm:$0xff] %v2689_v10 }
 0x4f9   : > { %v3256_v26 = vpop.f32.mrf.mxu1 }
 0x4fa   : > { %v2539_v51 = vadd.f32 %v3312_v40, %v3256_v26  ;;  %v3336_v26 = vpop.f32.mrf.mxu0 }
 0x4fb   : > { %v2212_v0 = vpop.f32.mrf.mxu1 }
 0x4fc   : > { %v2692_v5 = vadd.f32 %v4945_v45, %v2539_v51  ;;  %v2534_v32 = vadd.f32 %v2533_v7, %v2212_v0  ;;  %v2613_v0 = vpop.f32.mrf.mxu0 }
 0x4fe   : > { %2724 = vst [vmem:[%s4948_s27 + $0x18] sm:$0xff] %v2692_v5  ;;  %v2691_v46 = vadd.f32 %v4945_v45, %v2534_v32 }
 0x500   : > { %2723 = vst [vmem:[%s4948_s27 + $0x10] sm:$0xff] %v2691_v46 }
 0x501   : > { %v3259_v12 = vpop.f32.mrf.mxu1 }
 0x502   : > { %v2549_v23 = vadd.f32 %v3315_v25, %v3259_v12  ;;  %v3339_v12 = vpop.f32.mrf.mxu0 }
 0x503   : > { %v2222_v14 = vpop.f32.mrf.mxu1 }
 0x504   : > { %v2694_v31 = vadd.f32 %v4945_v45, %v2549_v23  ;;  %v2544_v18 = vadd.f32 %v2543_v6, %v2222_v14  ;;  %v2623_v14 = vpop.f32.mrf.mxu0 }
 0x506   : > { %2726 = vst [vmem:[%s4948_s27 + $0x28] sm:$0xff] %v2694_v31  ;;  %v2693_v41 = vadd.f32 %v4945_v45, %v2544_v18 }
 0x508   : > { %2725 = vst [vmem:[%s4948_s27 + $0x20] sm:$0xff] %v2693_v41 }
 0x509   : > { %v3262_v52 = vpop.f32.mrf.mxu1 }
 0x50a   : > { %v2559_v8 = vadd.f32 %v3318_v43, %v3262_v52  ;;  %v3342_v52 = vpop.f32.mrf.mxu0 }
 0x50b   : > { %v2232_v60 = vpop.f32.mrf.mxu1 }
 0x50c   : > { %v2696_v53 = vadd.f32 %v4945_v45, %v2559_v8  ;;  %v2554_v42 = vadd.f32 %v2553_v28, %v2232_v60  ;;  %v2633_v60 = vpop.f32.mrf.mxu0 }
 0x50e   : > { %2728 = vst [vmem:[%s4948_s27 + $0x38] sm:$0xff] %v2696_v53  ;;  %v2695_v55 = vadd.f32 %v4945_v45, %v2554_v42 }
 0x510   : > { %2727 = vst [vmem:[%s4948_s27 + $0x30] sm:$0xff] %v2695_v55 }
 0x511   : > { %v3265_v57 = vpop.f32.mrf.mxu1 }
 0x512   : > { %v2569_v4 = vadd.f32 %v3321_v2, %v3265_v57  ;;  %v3345_v57 = vpop.f32.mrf.mxu0 }
 0x513   : > { %v2242_v19 = vpop.f32.mrf.mxu1 }
 0x514   : > { %v2698_v30 = vadd.f32 %v4945_v45, %v2569_v4  ;;  %v2564_v16 = vadd.f32 %v2563_v1, %v2242_v19  ;;  %v2643_v19 = vpop.f32.mrf.mxu0 }
 0x516   : > { %2730 = vst [vmem:[%s4948_s27 + $0x48] sm:$0xff] %v2698_v30  ;;  %v2697_v27 = vadd.f32 %v4945_v45, %v2564_v16 }
 0x518   : > { %2729 = vst [vmem:[%s4948_s27 + $0x40] sm:$0xff] %v2697_v27 }
 0x519   : > { %v3268_v35 = vpop.f32.mrf.mxu1 }
 0x51a   : > { %v2579_v37 = vadd.f32 %v3324_v20, %v3268_v35  ;;  %v3348_v35 = vpop.f32.mrf.mxu0 }
 0x51b   : > { %v2252_v54 = vpop.f32.mrf.mxu1 }
 0x51c   : > { %v2700_v58 = vadd.f32 %v4945_v45, %v2579_v37  ;;  %v2574_v9 = vadd.f32 %v2573_v56, %v2252_v54  ;;  %v2653_v54 = vpop.f32.mrf.mxu0 }
 0x51e   : > { %2732 = vst [vmem:[%s4948_s27 + $0x58] sm:$0xff] %v2700_v58  ;;  %v2699_v36 = vadd.f32 %v4945_v45, %v2574_v9 }
 0x520   : > { %2731 = vst [vmem:[%s4948_s27 + $0x50] sm:$0xff] %v2699_v36 }
 0x521   : > { %v3271_v29 = vpop.f32.mrf.mxu1 }
 0x522   : > { %v2589_v38 = vadd.f32 %v3327_v11, %v3271_v29  ;;  %v3351_v29 = vpop.f32.mrf.mxu0 }
 0x523   : > { %v2262_v59 = vpop.f32.mrf.mxu1 }
 0x524   : > { %v2702_v13 = vadd.f32 %v4945_v45, %v2589_v38  ;;  %v2584_v39 = vadd.f32 %v2583_v33, %v2262_v59  ;;  %v2663_v59 = vpop.f32.mrf.mxu0 }
 0x526   : > { %2734 = vst [vmem:[%s4948_s27 + $0x68] sm:$0xff] %v2702_v13  ;;  %v2701_v47 = vadd.f32 %v4945_v45, %v2584_v39 }
 0x528   : > { %2733 = vst [vmem:[%s4948_s27 + $0x60] sm:$0xff] %v2701_v47 }
 0x529   : > { %v3274_v21 = vpop.f32.mrf.mxu1 }
 0x52a   : > { %v2599_v44 = vadd.f32 %v3330_v49, %v3274_v21  ;;  %v3354_v21 = vpop.f32.mrf.mxu0 }
 0x52b   : > { %v2272_v17 = vpop.f32.mrf.mxu1 }
 0x52c   : > { %v2704_v61 = vadd.f32 %v4945_v45, %v2599_v44  ;;  %v2594_v3 = vadd.f32 %v2593_v15, %v2272_v17  ;;  %v2673_v17 = vpop.f32.mrf.mxu0 }
 0x52e   : > { %2736 = vst [vmem:[%s4948_s27 + $0x78] sm:$0xff] %v2704_v61  ;;  %v2703_v62 = vadd.f32 %v4945_v45, %v2594_v3 }
 0x530   : > { %2735 = vst [vmem:[%s4948_s27 + $0x70] sm:$0xff] %v2703_v62 }
 0x531   : > { %v3277_v50 = vpop.f32.mrf.mxu1 }
 0x532   : > { %v2609_v22 = vadd.f32 %v3333_v24, %v3277_v50 }
 0x533   : > { %v2282_v63 = vpop.f32.mrf.mxu1 }
 0x534   : > { %v2706_v34 = vadd.f32 %v4945_v45, %v2609_v22  ;;  %v2604_v10 = vadd.f32 %v2603_v48, %v2282_v63 }
 0x536   : > { %2738 = vst [vmem:[%s4948_s27 + $0x88] sm:$0xff] %v2706_v34  ;;  %v2705_v40 = vadd.f32 %v4945_v45, %v2604_v10 }
 0x538   : > { %2737 = vst [vmem:[%s4948_s27 + $0x80] sm:$0xff] %v2705_v40 }
 0x539   : > { %v3280_v51 = vpop.f32.mrf.mxu1 }
 0x53a   : > { %v2619_v7 = vadd.f32 %v3336_v26, %v3280_v51 }
 0x53b   : > { %v2292_v5 = vpop.f32.mrf.mxu1 }
 0x53c   : > { %v2708_v32 = vadd.f32 %v4945_v45, %v2619_v7  ;;  %v2614_v46 = vadd.f32 %v2613_v0, %v2292_v5 }
 0x53e   : > { %2740 = vst [vmem:[%s4948_s27 + $0x98] sm:$0xff] %v2708_v32  ;;  %v2707_v25 = vadd.f32 %v4945_v45, %v2614_v46 }
 0x540   : > { %2739 = vst [vmem:[%s4948_s27 + $0x90] sm:$0xff] %v2707_v25 }
 0x541   : > { %v3283_v23 = vpop.f32.mrf.mxu1 }
 0x542   : > { %v2629_v6 = vadd.f32 %v3339_v12, %v3283_v23 }
 0x543   : > { %v2302_v31 = vpop.f32.mrf.mxu1 }
 0x544   : > { %v2710_v18 = vadd.f32 %v4945_v45, %v2629_v6  ;;  %v2624_v41 = vadd.f32 %v2623_v14, %v2302_v31 }
 0x546   : > { %2742 = vst [vmem:[%s4948_s27 + $0xa8] sm:$0xff] %v2710_v18  ;;  %v2709_v43 = vadd.f32 %v4945_v45, %v2624_v41 }
 0x548   : > { %2741 = vst [vmem:[%s4948_s27 + $0xa0] sm:$0xff] %v2709_v43 }
 0x549   : > { %v3286_v8 = vpop.f32.mrf.mxu1 }
 0x54a   : > { %v2639_v28 = vadd.f32 %v3342_v52, %v3286_v8 }
 0x54b   : > { %v2312_v53 = vpop.f32.mrf.mxu1 }
 0x54c   : > { %v2712_v42 = vadd.f32 %v4945_v45, %v2639_v28  ;;  %v2634_v55 = vadd.f32 %v2633_v60, %v2312_v53 }
 0x54e   : > { %2744 = vst [vmem:[%s4948_s27 + $0xb8] sm:$0xff] %v2712_v42  ;;  %v2711_v2 = vadd.f32 %v4945_v45, %v2634_v55 }
 0x550   : > { %2743 = vst [vmem:[%s4948_s27 + $0xb0] sm:$0xff] %v2711_v2 }
 0x551   : > { %v3289_v4 = vpop.f32.mrf.mxu1 }
 0x552   : > { %v2649_v1 = vadd.f32 %v3345_v57, %v3289_v4 }
 0x553   : > { %v2322_v30 = vpop.f32.mrf.mxu1 }
 0x554   : > { %v2714_v16 = vadd.f32 %v4945_v45, %v2649_v1  ;;  %v2644_v27 = vadd.f32 %v2643_v19, %v2322_v30 }
 0x556   : > { %2746 = vst [vmem:[%s4948_s27 + $0xc8] sm:$0xff] %v2714_v16  ;;  %v2713_v20 = vadd.f32 %v4945_v45, %v2644_v27 }
 0x558   : > { %2745 = vst [vmem:[%s4948_s27 + $0xc0] sm:$0xff] %v2713_v20 }
 0x559   : > { %v3292_v37 = vpop.f32.mrf.mxu1 }
 0x55a   : > { %v2659_v56 = vadd.f32 %v3348_v35, %v3292_v37 }
 0x55b   : > { %v2332_v58 = vpop.f32.mrf.mxu1 }
 0x55c   : > { %v2716_v9 = vadd.f32 %v4945_v45, %v2659_v56  ;;  %v2654_v36 = vadd.f32 %v2653_v54, %v2332_v58 }
 0x55e   : > { %2748 = vst [vmem:[%s4948_s27 + $0xd8] sm:$0xff] %v2716_v9  ;;  %v2715_v11 = vadd.f32 %v4945_v45, %v2654_v36 }
 0x560   : > { %2747 = vst [vmem:[%s4948_s27 + $0xd0] sm:$0xff] %v2715_v11 }
 0x561   : > { %v3295_v38 = vpop.f32.mrf.mxu1 }
 0x562   : > { %v2669_v33 = vadd.f32 %v3351_v29, %v3295_v38 }
 0x563   : > { %v2342_v13 = vpop.f32.mrf.mxu1 }
 0x564   : > { %v2718_v39 = vadd.f32 %v4945_v45, %v2669_v33  ;;  %v2664_v47 = vadd.f32 %v2663_v59, %v2342_v13 }
 0x566   : > { %2750 = vst [vmem:[%s4948_s27 + $0xe8] sm:$0xff] %v2718_v39  ;;  %v2717_v49 = vadd.f32 %v4945_v45, %v2664_v47 }
 0x568   : > { %2749 = vst [vmem:[%s4948_s27 + $0xe0] sm:$0xff] %v2717_v49 }
 0x569   : > { %v3298_v44 = vpop.f32.mrf.mxu1 }
 0x56a   : > { %v2679_v15 = vadd.f32 %v3354_v21, %v3298_v44 }
 0x56b   : > { %v2352_v61 = vpop.f32.mrf.mxu1 }
 0x56c   : > { %v2720_v3 = vadd.f32 %v4945_v45, %v2679_v15  ;;  %v2674_v62 = vadd.f32 %v2673_v17, %v2352_v61 }
 0x56e   : > { %2752 = vst [vmem:[%s4948_s27 + $0xf8] sm:$0xff] %v2720_v3  ;;  %v2719_v24 = vadd.f32 %v4945_v45, %v2674_v62 }
 0x570   : > { %2751 = vst [vmem:[%s4948_s27 + $0xf0] sm:$0xff] %v2719_v24 }
 0x571   : > { %3551 = shalt.err (!%p3548_p0)
}
 0x572   : > { %s3552_s29 = scalar_lea.hbm %s5015_s14, 4096  ;;  %s3556_s27 = scalar_lea.hbm %s5072_s9, 8192 }
 0x573   : > { %p3553_p2 = scmp.ne.s32.totalorder %s5015_s14, %s3552_s29  ;;  %p3557_p3 = scmp.lt.s32.totalorder %s5015_s14, %s5072_s9 }
 0x574   : > { %p3558_p6 = scmp.lt.s32.totalorder %s3556_s27, %s3552_s29 }
 0x575   : > { %p3554_p9 = pnand %p3553_p2, %p5275_p13 }
 0x576   : > { %p3559_p11 = por %p3558_p6, %p3557_p3 }
 0x577   : > { %p3555_p1 = pneg %p3554_p9 }
 0x579   : > { %p3560_p12 = pnand %p3559_p11, %p3555_p1 }
 0x57b   : > { %3563 = shalt.err (!%p3560_p12)
}
 0x57c   : > { %s3609_s28 = smov 128   ;;  %s3610_s16 = smov 8  }
 0x57d   : > { %3365 = dma.vmem_to_hbm [thread:$0]  (%p5275_p13), %s5017_s25, 4096, %s5015_s14, %s2754_s13, %s3609_s28, %s3609_s28, %s3610_s16  }
 0x57e PF: > { %s2782_s17 = sand.u32 1, %s3590_s30   ;;  %p5276_p4 = scmp.ne.s32.totalorder %s5156_s22, 0 }
 0x57f   : > { %p5277_p5 = scmp.ge.s32.totalorder %s3602_s12, 2  ;;  %s2783_s23 = scalar_lea.sflag [#allocation4], %s2782_s17 }
 0x581   : > { %p3372_p7 = pnand %p5277_p5, %p5276_p4 }
 0x583   : > { %p3373_p8 = pneg %p3372_p7 }
 0x585   : > { %3585 = dma.done.wait (%p3373_p8), %s2783_s23, 4096  }
 0x586   : > { %3587 = vsyncadd (%p3373_p8), %s2783_s23, 4294963200  ;;  %s5278_s20 = sld [smem:[#allocation8_spill]]  ;;  %p22_p10 = scmp.ge.s32.totalorder %s3686_s15, 4  }
 0x587   : > { %s5279_s11 = sld [smem:[#allocation9_spill]]  ;;  %s5280_s30 = smov %s3594_s10 }
 0x588   : > { %s5282_s12 = smov %s3686_s15  ;;  %24 = sbr.rel (!%p22_p10) target bundleno = 5 (0x5), region = 104 }
 0x58c   : > { %s5281_s10 = smov %s5278_s20 }
 0x58d   :  { %2788 = vsyncpa [#allocation3], 1 }
 0x58e   :  { %2790 = vsyncpa [#allocation3 + $0x1], 1 }
 0x58f   :  { %2791 = vsyncpa [#allocation4], 1 }
 0x590   :  { %2793 = vsyncpa [#allocation4 + $0x1], 1 }

</bundles_post_ra>
